<compile_context>
chip_gen: v7x
topology: tpu7x:2x2x1
jax: 0.10.0
libtpu: 0.0.40
codegen_flags: <defaults>
</compile_context>

<pallas_src>
import functools
import math

import jax
import jax.numpy as jnp
from jax.experimental import pallas as pl
from jax.experimental.pallas import tpu as pltpu


def _round_up(x, m):
    return ((x + m - 1) // m) * m


def _device_kind():
    try:
        return jax.devices()[0].device_kind.lower()
    except Exception:
        return ""


def flash_attn_kernel(q_ref, k_ref, v_ref, o_ref, m_sc, l_sc, acc_sc, qs_sc, *,
                      scale, kv_len, tk, mask_keys, exp_dtype, n_group, d_k,
                      recip_approx):
    """One (batch, head-group, q-tile, kv-tile) grid step of online softmax.

    q_ref : (G, tq, d_k)   k_ref/v_ref : (G, tk, d_k)   o_ref : (1, tq, G*d_k)
    """
    ki = pl.program_id(3)

    @pl.when(ki == 0)
    def _():
        m_sc[...] = jnp.full_like(m_sc, -jnp.inf)
        l_sc[...] = jnp.zeros_like(l_sc)
        acc_sc[...] = jnp.zeros_like(acc_sc)
        # Fold the softmax scale into q once per q-tile; the q block is
        # resident across the kv axis so re-doing it every kv step is waste.
        qs_sc[...] = (q_ref[...] * scale).astype(qs_sc.dtype)

    q = qs_sc[...]
    k = k_ref[...]
    v = v_ref[...]

    # scores = (Q * scale) @ K^T -> f32 accumulation on the MXU.
    s = jnp.einsum("gqd,gkd->gqk", q, k, preferred_element_type=jnp.float32)

    if mask_keys:
        kpos = ki * tk + jax.lax.broadcasted_iota(jnp.int32, s.shape, 2)
        s = jnp.where(kpos < kv_len, s, -jnp.inf)

    # online softmax update (statistics in f32)
    m_prev = m_sc[...]
    m_new = jnp.maximum(m_prev, s.max(-1, keepdims=True))
    alpha = jnp.exp(m_prev - m_new)
    # Big exp in bf16 on v6e/v7x (bf16 EUP), f32 on v5e / f32-compute override.
    p = jnp.exp((s - m_new).astype(exp_dtype))
    # Row-sum of p is always accumulated in f32 (softmax denominator).
    l_sc[...] = alpha * l_sc[...] + p.sum(-1, keepdims=True, dtype=jnp.float32)
    acc_sc[...] = alpha * acc_sc[...] + jnp.einsum(
        "gqk,gkd->gqd", p.astype(v.dtype), v, preferred_element_type=jnp.float32)
    m_sc[...] = m_new

    @pl.when(ki == pl.num_programs(3) - 1)
    def _():
        # Lane-dense finalize: assemble the (tq, G*d_k) slab so the HBM
        # writeback DMA of the output block is full-width (no masked stores).
        parts = []
        for g in range(n_group):
            inv_l = pl.reciprocal(l_sc[g], approx=recip_approx)     # (tq, 1)
            parts.append((acc_sc[g] * inv_l).astype(o_ref.dtype))   # (tq, d_k)
        o_ref[0] = parts[0] if n_group == 1 else jnp.concatenate(parts, axis=-1)


def flash_attention(Q, K, V, n_heads, *, tq=None, tk=None, head_group_size=None,
                    compute_dtype=jnp.bfloat16, kv_buffers=2):
    """Forward pass identical to the PyTorch FlashAttention module."""
    B, S, D = Q.shape
    assert D % n_heads == 0
    d_k = D // n_heads
    scale = 1.0 / math.sqrt(d_k)
    out_dtype = Q.dtype
    compute_dtype = jnp.dtype(compute_dtype)
    BH = B * n_heads

    kind = _device_kind()
    # bf16 exp only where the EUP has a bf16 path (v6e/v7x); v5e keeps f32.
    use_bf16_exp = (compute_dtype == jnp.dtype(jnp.bfloat16)) and ("v5" not in kind)
    exp_dtype = jnp.bfloat16 if use_bf16_exp else jnp.float32

    # ---- head grouping: smallest divisor of n_heads making the output slab
    #      (G * d_k) a multiple of 128 lanes; fall back to the full D slab. ----
    def pick_group():
        if head_group_size is not None:
            g = math.gcd(int(head_group_size), n_heads)
            if (g * d_k) % 128 == 0 or g == n_heads:
                return g
        for g in range(1, n_heads + 1):
            if n_heads % g == 0 and (g * d_k) % 128 == 0:
                return g
        return n_heads

    G = pick_group()
    HG = n_heads // G

    # ---- tile sizes (sweep-able; defaults sized for the HBM ridge) ----
    tq = 512 if tq is None else int(tq)      # on v6e with long S, try 1024
    tk = 256 if tk is None else int(tk)
    tq = max(8, _round_up(min(tq, _round_up(S, 8)), 8))
    tk = max(128, _round_up(min(tk, _round_up(S, 128)), 128))
    # v7x megacore: keep >= 2 parallel grid steps whenever the problem allows.
    if B * HG * (_round_up(S, tq) // tq) < 2 and S > 8:
        tq = max(8, _round_up((S + 1) // 2, 8))
    Sq = _round_up(S, tq)       # padded q-length
    Sk = _round_up(S, tk)       # padded kv-length (padded keys masked in-kernel)
    mask_keys = Sk != S

    # ---- layout plumbing: head split fused with the compute-dtype cast ----
    # TODO(synk): emit this layout straight from the QKV projections upstream
    # to drop these input passes entirely.
    def split_heads(x, s_pad):
        x = x.astype(compute_dtype)
        x = x.reshape(B, S, n_heads, d_k).transpose(0, 2, 1, 3).reshape(BH, S, d_k)
        if s_pad != S:
            x = jnp.pad(x, ((0, 0), (0, s_pad - S), (0, 0)))
        return x

    q = split_heads(Q, Sq)
    k = split_heads(K, Sk)
    v = split_heads(V, Sk)

    kv_mode = {} if int(kv_buffers) <= 2 else {"pipeline_mode": pl.Buffered(int(kv_buffers))}

    out = pl.pallas_call(
        functools.partial(
            flash_attn_kernel, scale=scale, kv_len=S, tk=tk, mask_keys=mask_keys,
            exp_dtype=exp_dtype, n_group=G, d_k=d_k,
            recip_approx=(jnp.dtype(out_dtype) != jnp.dtype(jnp.float32))),
        out_shape=jax.ShapeDtypeStruct((B, Sq, D), out_dtype),
        grid_spec=pltpu.PrefetchScalarGridSpec(
            num_scalar_prefetch=0,
            grid=(B, HG, Sq // tq, Sk // tk),
            in_specs=[
                pl.BlockSpec((G, tq, d_k), lambda b, hg, qi, ki: (b * HG + hg, qi, 0)),
                pl.BlockSpec((G, tk, d_k), lambda b, hg, qi, ki: (b * HG + hg, ki, 0),
                             **kv_mode),
                pl.BlockSpec((G, tk, d_k), lambda b, hg, qi, ki: (b * HG + hg, ki, 0),
                             **kv_mode),
            ],
            # Output written directly in native (B, S, D) layout: lane-dense
            # (tq, G*d_k) slabs, no wrapper-side output transpose.
            out_specs=pl.BlockSpec((1, tq, G * d_k), lambda b, hg, qi, ki: (b, qi, hg)),
            scratch_shapes=[
                pltpu.VMEM((G, tq, 1), jnp.float32),      # running max   m_i
                pltpu.VMEM((G, tq, 1), jnp.float32),      # running denom l_i
                pltpu.VMEM((G, tq, d_k), jnp.float32),    # output accumulator
                pltpu.VMEM((G, tq, d_k), compute_dtype),  # pre-scaled q tile
            ],
        ),
        compiler_params=pltpu.CompilerParams(
            dimension_semantics=("parallel", "parallel", "parallel", "arbitrary")),
    )(q, k, v)

    if Sq != S:
        out = out[:, :S, :]
    return out


def reference_attention(Q, K, V, n_heads):
    """Pure-JAX f32 reference reproducing the PyTorch module's math."""
    B, S, D = Q.shape
    d_k = D // n_heads

    def split(x):
        return x.reshape(B, S, n_heads, d_k).transpose(0, 2, 1, 3)

    q, k, v = split(Q), split(K), split(V)
    scores = jnp.einsum("bhqd,bhkd->bhqk", q, k) / math.sqrt(d_k)
    attn = jax.nn.softmax(scores, axis=-1)
    out = jnp.einsum("bhqk,bhkd->bhqd", attn, v)
    return out.transpose(0, 2, 1, 3).reshape(B, S, D)


if __name__ == "__main__":
    # Small shapes consistent with the module (d_model % n_heads == 0, d_k=64).
    batch, seq, d_model, n_heads = 2, 128, 256, 4

    key = jax.random.PRNGKey(0)
    kq, kk, kv = jax.random.split(key, 3)
    Q = jax.random.normal(kq, (batch, seq, d_model), dtype=jnp.float32)
    K = jax.random.normal(kk, (batch, seq, d_model), dtype=jnp.float32)
    V = jax.random.normal(kv, (batch, seq, d_model), dtype=jnp.float32)

    fn = jax.jit(lambda a, b, c: flash_attention(a, b, c, n_heads))
    out = jax.block_until_ready(fn(Q, K, V))

    ref = reference_attention(Q, K, V, n_heads)
    assert out.shape == (batch, seq, d_model)
    # bf16 MXU/EUP compute (f32 accumulation) -> bf16-level tolerance vs f32 ref
    assert jnp.allclose(out, ref, atol=2e-2, rtol=2e-2), "mismatch vs reference"

    print("KERNEL_OK")
</pallas_src>

<mosaic_0001>
module attributes {stable_mosaic.version = 11 : i64} {
  func.func @flash_attn_kernel(%arg0: i32, %arg1: i32, %arg2: i32, %arg3: i32, %arg4: memref<2x128x64xbf16, #tpu.memory_space<vmem>>, %arg5: memref<2x128x64xbf16, #tpu.memory_space<vmem>>, %arg6: memref<2x128x64xbf16, #tpu.memory_space<vmem>>, %arg7: memref<1x128x128xf32, #tpu.memory_space<vmem>>, %arg8: memref<2x128x1xf32, #tpu.memory_space<vmem>>, %arg9: memref<2x128x1xf32, #tpu.memory_space<vmem>>, %arg10: memref<2x128x64xf32, #tpu.memory_space<vmem>>, %arg11: memref<2x128x64xbf16, #tpu.memory_space<vmem>>) attributes {dimension_semantics = [#tpu.dimension_semantics<parallel>, #tpu.dimension_semantics<parallel>, #tpu.dimension_semantics<parallel>, #tpu.dimension_semantics<arbitrary>], iteration_bounds = array<i64: 2, 2, 1, 1>, scalar_prefetch = 0 : i64, scratch_operands = 4 : i64, tpu.core_type = #tpu.core_type<tc>, window_params = [{transform_indices = @transform_0, window_bounds = array<i64: 2, 128, 64>}, {transform_indices = @transform_1, window_bounds = array<i64: 2, 128, 64>}, {transform_indices = @transform_2, window_bounds = array<i64: 2, 128, 64>}, {transform_indices = @transform_3, window_bounds = array<i64: 1, 128, 128>}]} {
    %c0_i32 = arith.constant 0 : i32
    %0 = arith.cmpi eq, %arg3, %c0_i32 : i32
    %1 = arith.extui %0 : i1 to i32
    %c0_i32_0 = arith.constant 0 : i32
    %2 = arith.cmpi ne, %1, %c0_i32_0 : i32
    scf.if %2 {
      %cst_32 = arith.constant 0xFF800000 : f32
      %34 = vector.broadcast %cst_32 : f32 to vector<2x128x1xf32>
      %c0_33 = arith.constant 0 : index
      %c0_34 = arith.constant 0 : index
      %c0_35 = arith.constant 0 : index
      %35 = vector.load %arg8[%c0_33, %c0_34, %c0_35] : memref<2x128x1xf32, #tpu.memory_space<vmem>>, vector<2x128x1xf32>
      tpu.vector_store %arg8[%c0_33, %c0_34, %c0_35], %34 {strides = array<i32>} : memref<2x128x1xf32, #tpu.memory_space<vmem>>, vector<2x128x1xf32>,
      %cst_36 = arith.constant 0.000000e+00 : f32
      %36 = vector.broadcast %cst_36 : f32 to vector<2x128x1xf32>
      %c0_37 = arith.constant 0 : index
      %c0_38 = arith.constant 0 : index
      %c0_39 = arith.constant 0 : index
      %37 = vector.load %arg9[%c0_37, %c0_38, %c0_39] : memref<2x128x1xf32, #tpu.memory_space<vmem>>, vector<2x128x1xf32>
      tpu.vector_store %arg9[%c0_37, %c0_38, %c0_39], %36 {strides = array<i32>} : memref<2x128x1xf32, #tpu.memory_space<vmem>>, vector<2x128x1xf32>,
      %cst_40 = arith.constant 0.000000e+00 : f32
      %38 = vector.broadcast %cst_40 : f32 to vector<2x128x64xf32>
      %c0_41 = arith.constant 0 : index
      %c0_42 = arith.constant 0 : index
      %c0_43 = arith.constant 0 : index
      %39 = vector.load %arg10[%c0_41, %c0_42, %c0_43] : memref<2x128x64xf32, #tpu.memory_space<vmem>>, vector<2x128x64xf32>
      tpu.vector_store %arg10[%c0_41, %c0_42, %c0_43], %38 {strides = array<i32>} : memref<2x128x64xf32, #tpu.memory_space<vmem>>, vector<2x128x64xf32>,
      %c0_44 = arith.constant 0 : index
      %c0_45 = arith.constant 0 : index
      %c0_46 = arith.constant 0 : index
      %40 = vector.load %arg4[%c0_44, %c0_45, %c0_46] : memref<2x128x64xbf16, #tpu.memory_space<vmem>>, vector<2x128x64xbf16>
      %cst_47 = arith.constant 1.250000e-01 : bf16
      %41 = vector.broadcast %cst_47 : bf16 to vector<2x128x64xbf16>
      %42 = arith.mulf %40, %41 : vector<2x128x64xbf16>
      %c0_48 = arith.constant 0 : index
      %c0_49 = arith.constant 0 : index
      %c0_50 = arith.constant 0 : index
      %43 = vector.load %arg11[%c0_48, %c0_49, %c0_50] : memref<2x128x64xbf16, #tpu.memory_space<vmem>>, vector<2x128x64xbf16>
      tpu.vector_store %arg11[%c0_48, %c0_49, %c0_50], %42 {strides = array<i32>} : memref<2x128x64xbf16, #tpu.memory_space<vmem>>, vector<2x128x64xbf16>,
    } else {
    }
    %c0 = arith.constant 0 : index
    %c0_1 = arith.constant 0 : index
    %c0_2 = arith.constant 0 : index
    %3 = vector.load %arg11[%c0, %c0_1, %c0_2] : memref<2x128x64xbf16, #tpu.memory_space<vmem>>, vector<2x128x64xbf16>
    %c0_3 = arith.constant 0 : index
    %c0_4 = arith.constant 0 : index
    %c0_5 = arith.constant 0 : index
    %4 = vector.load %arg5[%c0_3, %c0_4, %c0_5] : memref<2x128x64xbf16, #tpu.memory_space<vmem>>, vector<2x128x64xbf16>
    %c0_6 = arith.constant 0 : index
    %c0_7 = arith.constant 0 : index
    %c0_8 = arith.constant 0 : index
    %5 = vector.load %arg6[%c0_6, %c0_7, %c0_8] : memref<2x128x64xbf16, #tpu.memory_space<vmem>>, vector<2x128x64xbf16>
    "tpu.trace_start"() <{level = 10 : i32, message = "gqd,gkd->gqk"}> : () -> ()
    %cst = arith.constant dense<0.000000e+00> : vector<2x128x128xf32>
    %6 = tpu.matmul %3, %4, %cst {dimension_numbers = #tpu.dot_dimension_numbers<[2], [2], [1], [1], [0, 0, 0, 1, 1, 1], [0], [0]>} : vector<2x128x64xbf16>, vector<2x128x64xbf16>, vector<2x128x128xf32> -> vector<2x128x128xf32>
    "tpu.trace_stop"() : () -> ()
    %c0_9 = arith.constant 0 : index
    %c0_10 = arith.constant 0 : index
    %c0_11 = arith.constant 0 : index
    %7 = vector.load %arg8[%c0_9, %c0_10, %c0_11] : memref<2x128x1xf32, #tpu.memory_space<vmem>>, vector<2x128x1xf32>
    %cst_12 = arith.constant dense<0xFF800000> : vector<2x128xf32>
    %8 = vector.multi_reduction <maximumf>, %6, %cst_12 [2] : vector<2x128x128xf32> to vector<2x128xf32>
    %9 = vector.shape_cast %8 : vector<2x128xf32> to vector<2x128x1xf32>
    %10 = arith.maximumf %7, %9 : vector<2x128x1xf32>
    %11 = arith.subf %7, %10 : vector<2x128x1xf32>
    %12 = math.exp %11 : vector<2x128x1xf32>
    %13 = vector.broadcast %10 : vector<2x128x1xf32> to vector<2x128x128xf32>
    %14 = arith.subf %6, %13 : vector<2x128x128xf32>
    %15 = arith.truncf %14 : vector<2x128x128xf32> to vector<2x128x128xbf16>
    %16 = math.exp %15 : vector<2x128x128xbf16>
    %c0_13 = arith.constant 0 : index
    %c0_14 = arith.constant 0 : index
    %c0_15 = arith.constant 0 : index
    %17 = vector.load %arg9[%c0_13, %c0_14, %c0_15] : memref<2x128x1xf32, #tpu.memory_space<vmem>>, vector<2x128x1xf32>
    %18 = arith.mulf %12, %17 : vector<2x128x1xf32>
    %19 = arith.extf %16 : vector<2x128x128xbf16> to vector<2x128x128xf32>
    %cst_16 = arith.constant dense<0.000000e+00> : vector<2x128xf32>
    %20 = vector.multi_reduction <add>, %19, %cst_16 [2] : vector<2x128x128xf32> to vector<2x128xf32>
    %21 = vector.shape_cast %20 : vector<2x128xf32> to vector<2x128x1xf32>
    %22 = arith.addf %18, %21 : vector<2x128x1xf32>
    %c0_17 = arith.constant 0 : index
    %c0_18 = arith.constant 0 : index
    %c0_19 = arith.constant 0 : index
    %23 = vector.load %arg9[%c0_17, %c0_18, %c0_19] : memref<2x128x1xf32, #tpu.memory_space<vmem>>, vector<2x128x1xf32>
    tpu.vector_store %arg9[%c0_17, %c0_18, %c0_19], %22 {strides = array<i32>} : memref<2x128x1xf32, #tpu.memory_space<vmem>>, vector<2x128x1xf32>,
    %c0_20 = arith.constant 0 : index
    %c0_21 = arith.constant 0 : index
    %c0_22 = arith.constant 0 : index
    %24 = vector.load %arg10[%c0_20, %c0_21, %c0_22] : memref<2x128x64xf32, #tpu.memory_space<vmem>>, vector<2x128x64xf32>
    %25 = vector.broadcast %12 : vector<2x128x1xf32> to vector<2x128x64xf32>
    %26 = arith.mulf %25, %24 : vector<2x128x64xf32>
    "tpu.trace_start"() <{level = 10 : i32, message = "gqk,gkd->gqd"}> : () -> ()
    %cst_23 = arith.constant dense<0.000000e+00> : vector<2x128x64xf32>
    %27 = tpu.matmul %16, %5, %cst_23 {dimension_numbers = #tpu.dot_dimension_numbers<[2], [1], [1], [2], [0, 0, 0, 1, 1, 2], [0], [0]>} : vector<2x128x128xbf16>, vector<2x128x64xbf16>, vector<2x128x64xf32> -> vector<2x128x64xf32>
    "tpu.trace_stop"() : () -> ()
    %28 = arith.addf %26, %27 : vector<2x128x64xf32>
    %c0_24 = arith.constant 0 : index
    %c0_25 = arith.constant 0 : index
    %c0_26 = arith.constant 0 : index
    %29 = vector.load %arg10[%c0_24, %c0_25, %c0_26] : memref<2x128x64xf32, #tpu.memory_space<vmem>>, vector<2x128x64xf32>
    tpu.vector_store %arg10[%c0_24, %c0_25, %c0_26], %28 {strides = array<i32>} : memref<2x128x64xf32, #tpu.memory_space<vmem>>, vector<2x128x64xf32>,
    %c0_27 = arith.constant 0 : index
    %c0_28 = arith.constant 0 : index
    %c0_29 = arith.constant 0 : index
    %30 = vector.load %arg8[%c0_27, %c0_28, %c0_29] : memref<2x128x1xf32, #tpu.memory_space<vmem>>, vector<2x128x1xf32>
    tpu.vector_store %arg8[%c0_27, %c0_28, %c0_29], %10 {strides = array<i32>} : memref<2x128x1xf32, #tpu.memory_space<vmem>>, vector<2x128x1xf32>,
    %c0_i32_30 = arith.constant 0 : i32
    %31 = arith.cmpi eq, %arg3, %c0_i32_30 : i32
    %32 = arith.extui %31 : i1 to i32
    %c0_i32_31 = arith.constant 0 : i32
    %33 = arith.cmpi ne, %32, %c0_i32_31 : i32
    scf.if %33 {
      %c0_32 = arith.constant 0 : index
      %c0_33 = arith.constant 0 : index
      %c0_34 = arith.constant 0 : index
      %34 = vector.load %arg9[%c0_32, %c0_33, %c0_34] : memref<2x128x1xf32, #tpu.memory_space<vmem>>, vector<1x128x1xf32>
      %35 = vector.shape_cast %34 : vector<1x128x1xf32> to vector<128x1xf32>
      %36 = tpu.reciprocal %35 : vector<128x1xf32> -> vector<128x1xf32>
      %c0_35 = arith.constant 0 : index
      %c0_36 = arith.constant 0 : index
      %c0_37 = arith.constant 0 : index
      %37 = vector.load %arg10[%c0_35, %c0_36, %c0_37] : memref<2x128x64xf32, #tpu.memory_space<vmem>>, vector<1x128x64xf32>
      %38 = vector.shape_cast %37 : vector<1x128x64xf32> to vector<128x64xf32>
      %39 = vector.broadcast %36 : vector<128x1xf32> to vector<128x64xf32>
      %40 = arith.mulf %38, %39 : vector<128x64xf32>
      %c1 = arith.constant 1 : index
      %c0_38 = arith.constant 0 : index
      %c0_39 = arith.constant 0 : index
      %41 = vector.load %arg9[%c1, %c0_38, %c0_39] : memref<2x128x1xf32, #tpu.memory_space<vmem>>, vector<1x128x1xf32>
      %42 = vector.shape_cast %41 : vector<1x128x1xf32> to vector<128x1xf32>
      %43 = tpu.reciprocal %42 : vector<128x1xf32> -> vector<128x1xf32>
      %c1_40 = arith.constant 1 : index
      %c0_41 = arith.constant 0 : index
      %c0_42 = arith.constant 0 : index
      %44 = vector.load %arg10[%c1_40, %c0_41, %c0_42] : memref<2x128x64xf32, #tpu.memory_space<vmem>>, vector<1x128x64xf32>
      %45 = vector.shape_cast %44 : vector<1x128x64xf32> to vector<128x64xf32>
      %46 = vector.broadcast %43 : vector<128x1xf32> to vector<128x64xf32>
      %47 = arith.mulf %45, %46 : vector<128x64xf32>
      %48 = tpu.concatenate %40, %47 in 1 : vector<128x64xf32>, vector<128x64xf32> -> vector<128x128xf32>
      %c0_43 = arith.constant 0 : index
      %c0_44 = arith.constant 0 : index
      %c0_45 = arith.constant 0 : index
      %49 = vector.load %arg7[%c0_43, %c0_44, %c0_45] : memref<1x128x128xf32, #tpu.memory_space<vmem>>, vector<1x128x128xf32>
      %50 = vector.shape_cast %49 : vector<1x128x128xf32> to vector<128x128xf32>
      %51 = vector.shape_cast %48 : vector<128x128xf32> to vector<1x128x128xf32>
      tpu.vector_store %arg7[%c0_43, %c0_44, %c0_45], %51 {strides = array<i32>} : memref<1x128x128xf32, #tpu.memory_space<vmem>>, vector<1x128x128xf32>,
    } else {
    }
    return
  }
  func.func @transform_0(%arg0: i32, %arg1: i32, %arg2: i32, %arg3: i32) -> (i32, i32, i32) {
    %c2_i32 = arith.constant 2 : i32
    %0 = arith.muli %arg0, %c2_i32 : i32
    %1 = arith.addi %0, %arg1 : i32
    %c0_i32 = arith.constant 0 : i32
    %c0_i32_0 = arith.constant 0 : i32
    return %1, %arg2, %c0_i32 : i32, i32, i32
  }
  func.func @transform_1(%arg0: i32, %arg1: i32, %arg2: i32, %arg3: i32) -> (i32, i32, i32) {
    %c2_i32 = arith.constant 2 : i32
    %0 = arith.muli %arg0, %c2_i32 : i32
    %1 = arith.addi %0, %arg1 : i32
    %c0_i32 = arith.constant 0 : i32
    %c0_i32_0 = arith.constant 0 : i32
    return %1, %arg3, %c0_i32 : i32, i32, i32
  }
  func.func @transform_2(%arg0: i32, %arg1: i32, %arg2: i32, %arg3: i32) -> (i32, i32, i32) {
    %c2_i32 = arith.constant 2 : i32
    %0 = arith.muli %arg0, %c2_i32 : i32
    %1 = arith.addi %0, %arg1 : i32
    %c0_i32 = arith.constant 0 : i32
    %c0_i32_0 = arith.constant 0 : i32
    return %1, %arg3, %c0_i32 : i32, i32, i32
  }
  func.func @transform_3(%arg0: i32, %arg1: i32, %arg2: i32, %arg3: i32) -> (i32, i32, i32) {
    %c0_i32 = arith.constant 0 : i32
    return %arg0, %arg2, %arg1 : i32, i32, i32
  }
}

</mosaic_0001>

<bundles_post_ra>
// kernel: _lambda_.1
= control target key start
LH: loop header
LB: loop body
LE: loop exit
PB: predicated region body
PF: predicated region fallthrough
CT: control target
= control target key end

     0   :  { %8 = vsyncpa [#allocation7], 0  ;;  %s4908_s0 = inlined_call_operand.vmem [shape: bf16[8,128,64], index: 0, kind: input, shape index: {}]   ;;  %s4909_s1 = inlined_call_operand.vmem [shape: bf16[8,128,64], index: 1, kind: input, shape index: {}]   ;;  %s4910_s2 = inlined_call_operand.vmem [shape: bf16[8,128,64], index: 2, kind: input, shape index: {}]   ;;  %s4911_s3 = inlined_call_operand.hbm [shape: f32[2,128,256], index: 3, kind: output, shape index: {}]  }
   0x1   :  { %10 = vsyncpa [#allocation7 + $0x1], 0  ;;  %s3623_s12 = smov 0   ;;  %s3625_s13 = smov 0  }
   0x2   :  { %s3627_s14 = smov 0   ;;  %s3629_s15 = smov 0  }
   0x3   :  { %s3631_s16 = smov 0   ;;  %s3633_s17 = smov 0  }
   0x4   :  { %s3635_s18 = smov 0   ;;  %s3637_s19 = smov 0  }
   0x5 LB: > { %s2923_s20 = sadd.s32 4294967295, %s3593_s19   ;;  %s2924_s21 = sadd.s32 4294967294, %s3593_s19   ;;  %s3593_s19 = sphi %s3637_s19, %s16_s19   ;;  %s3589_s18 = sphi %s3635_s18, %s5048_s18   ;;  %s3585_s17 = sphi %s3633_s17, %s5047_s17   ;;  %s3581_s16 = sphi %s3631_s16, %s5046_s16   ;;  %s3577_s15 = sphi %s3629_s15, %s5045_s15   ;;  %s3573_s14 = sphi %s3627_s14, %s5044_s14   ;;  %s3569_s13 = sphi %s3625_s13, %s5043_s13   ;;  %s3565_s12 = sphi %s3623_s12, %s5042_s12  }
   0x6   : > { %s38_s22 = sadd.s32 1, %s3585_s17  ;;  %s42_s23 = sadd.s32 1, %s3589_s18 }
   0x7   : > { %p40_p0 = scmp.ge.s32.totalorder %s38_s22, 2  ;;  %p159_p1 = scmp.ne.s32.totalorder %s3573_s14, %s3569_s13 }
   0x8   : > { %p160_p2 = scmp.eq.s32.totalorder %s2923_s20, 3  ;;  %p165_p5 = scmp.ne.s32.totalorder %s3569_s13, %s3565_s12 }
   0x9   : > { %s5050_s22 = smov (%p40_p0, %s38_s22), 0  ;;  %s5052_s23 = smov (!%p40_p0, %s42_s23), %s3589_s18 }
   0xa   : > { %s145_s24 = ssub.s32 %s3585_s17, %s5050_s22  ;;  %p3674_p3 = por %p160_p2, %p159_p1 }
   0xb   : > { %p44_p4 = scmp.ge.s32.totalorder %s5052_s23, 2  ;;  %p166_p6 = scmp.eq.s32.totalorder %s2924_s21, 3 }
   0xc   : > { %p2933_p7 = scmp.ge.s32.totalorder %s3593_s19, 1  ;;  %p241_p9 = scmp.lt.s32.totalorder %s3593_s19, 5 }
   0xd   : > { %s5054_s23 = smov (%p44_p4, %s5052_s23), 0  ;;  %p3683_p8 = por %p166_p6, %p165_p5 }
   0xe   : > { %s142_s27 = ssub.s32 %s3589_s18, %s5054_s23  ;;  %s149_s28 = sadd.s32 1, %s3573_s14 }
   0xf   : > { %s146_s29 = sor.u32 %s145_s24, %s142_s27  ;;  %p242_p10 = pnand %p2933_p7, %p241_p9 }
  0x10   : > { %p147_p11 = scmp.eq.s32.totalorder %s146_s29, 0 }
  0x11   : > { %245 = sbr.rel (%p242_p10) target bundleno = 1160 (0x488), region = 32 }
  0x12   : > { %s3692_s30 = scalar_select %p147_p11, %s3573_s14, %s149_s28  }
  0x18   : > { %s2935_s4 = sshll.u32 %s3581_s16, 1  ;;  %vm416_vm0 = vcmask 523264   ;;  %vm351_vm1 = vcmask 7168   ;;  %s3598_s29 = smov 64  }
  0x19   : > { %s297_s5 = sadd.s32 %s3577_s15, %s2935_s4  ;;  %s293_s4 = sand.u32 1, %s3569_s13  }
  0x1a   : > { %s2936_s6 = sshll.u32 %s297_s5, 1  ;;  %s2934_s5 = sshll.u32 %s293_s4, 7 }
  0x1b   : > { %p300_p12 = scmp.lt.s32.totalorder %s2936_s6, 7  ;;  %s4856_s20 = scalar_lea.sflag [#allocation7], %s293_s4 }
  0x1c   : > { %s3599_s24 = smov [#allocation6]  }
  0x1d   : > { %s5056_s6 = smov (!%p300_p12, %s2936_s6), 7  ;;  %s3503_s27 = sshll.u32 %s3599_s24, 4  ;;  %s3504_s27 = int_to_ptr.vmem [resolvable:$false] %s3503_s27 }
  0x1e   : > { %s3696_s7 = sshll.u32 %s5056_s6, 6  ;;  %s4800_s6 = scalar_lea.vmem [#allocation6], %s2934_s5 }
  0x1f   : > { %s3702_s10 = scalar_lea.vmem %s4909_s1, %s3696_s7  ;;  %s3724_s21 = scalar_lea.vmem %s4908_s0, %s3696_s7 }
  0x20   : > { %v3307_v0 = vld [vmem:[%s3702_s10] sm:$0xff]   ;;  %v3309_v3 = vld [vmem:[%s3702_s10 + $0x8] sm:$0xff]   ;;  %v3311_v7 = vld [vmem:[%s3702_s10 + $0x10] sm:$0xff]   ;;  %s4084_s28 = scalar_lea.vmem %s4910_s2, %s3696_s7  ;;  %s3012_s7 = sshll.u32 %s3581_s16, 5 }
  0x21   : > { %v3308_v1 = vld [vmem:[%s3702_s10 + $0x40] sm:$0xff]   ;;  %3211 = vmatprep.subr.msk.bf16.mxu0 %vm416_vm0, %v3307_v0  ;;  %v771_v2 = vsel %vm416_vm0, %v3307_v0, 0  ;;  %v3310_v5 = vld [vmem:[%s3702_s10 + $0x48] sm:$0xff]   ;;  %v774_v6 = vsel %vm416_vm0, %v3309_v3, 0  ;;  %v3312_v9 = vld [vmem:[%s3702_s10 + $0x50] sm:$0xff]   ;;  %v777_v12 = vsel %vm416_vm0, %v3311_v7, 0  ;;  %s2795_s8 = sadd.s32 %s3577_s15, %s3012_s7 }
  0x22   : > { %3219 = vmatprep.subr.msk.bf16.mxu1 %vm416_vm0, %v3308_v1  ;;  %3084 = vmatpush3.bf16.xpose.msra.mxu0 %v771_v2  ;;  %v956_v4 = vsel %vm416_vm0, %v3308_v1, 0  ;;  %v959_v8 = vsel %vm416_vm0, %v3310_v5, 0  ;;  %v3313_v10 = vld [vmem:[%s3702_s10 + $0x18] sm:$0xff]   ;;  %v962_v13 = vsel %vm416_vm0, %v3312_v9, 0  ;;  %v449_v14 = vld [vmem:[%s3724_s21] sm:$0xf] }
  0x23   : > { %3116 = vmatpush3.bf16.xpose.msra.mxu1 %v956_v4  ;;  %3212 = vmatprep.subr.msk.bf16.mxu0 %vm416_vm0, %v3309_v3  ;;  %v3314_v11 = vld [vmem:[%s3702_s10 + $0x58] sm:$0xff]   ;;  %v450_v15 = vld [vmem:[%s3724_s21 + $0x4] sm:$0xf]  ;;  %v780_v16 = vsel %vm416_vm0, %v3313_v10, 0  ;;  %v481_v18 = vmul.bf16 1040203264, %v449_v14 }
  0x24   : > { %3220 = vmatprep.subr.msk.bf16.mxu1 %vm416_vm0, %v3310_v5  ;;  %v965_v17 = vsel %vm416_vm0, %v3314_v11, 0  ;;  %v482_v19 = vmul.bf16 1040203264, %v450_v15  ;;  %v465_v20 = vld [vmem:[%s3724_s21 + $0x40] sm:$0xf]  ;;  %v3318_v15 = vld [vmem:[%s3702_s10 + $0x68] sm:$0xff]  }
  0x25   : > { %v466_v21 = vld [vmem:[%s3724_s21 + $0x44] sm:$0xf]  ;;  %v451_v22 = vld [vmem:[%s3724_s21 + $0x8] sm:$0xf]  ;;  %v497_v24 = vmul.bf16 1040203264, %v465_v20 }
  0x26   : > { %v2947_v23 = vcombine.low %v481_v18, %v482_v19  ;;  %v498_v25 = vmul.bf16 1040203264, %v466_v21  ;;  %v452_v26 = vld [vmem:[%s3724_s21 + $0xc] sm:$0xf]  ;;  %v483_v27 = vmul.bf16 1040203264, %v451_v22 }
  0x27   : > { %v484_v28 = vmul.bf16 1040203264, %v452_v26  ;;  %v467_v29 = vld [vmem:[%s3724_s21 + $0x48] sm:$0xf]  ;;  %v468_v31 = vld [vmem:[%s3724_s21 + $0x4c] sm:$0xf] }
  0x28   : > { %609 = vst.msk [vmem:[#allocation5] sm:$0xff] %vm416_vm0, %v2947_v23  ;;  %v2955_v30 = vcombine.low %v497_v24, %v498_v25  ;;  %v499_v32 = vmul.bf16 1040203264, %v467_v29  ;;  %v453_v33 = vld [vmem:[%s3724_s21 + $0x10] sm:$0xf]  ;;  %v3315_v34 = vld [vmem:[%s3702_s10 + $0x20] sm:$0xff]  }
  0x29   : > { %v2948_v35 = vcombine.low %v483_v27, %v484_v28  ;;  %v500_v36 = vmul.bf16 1040203264, %v468_v31  ;;  %v454_v37 = vld [vmem:[%s3724_s21 + $0x14] sm:$0xf]  ;;  %v485_v38 = vmul.bf16 1040203264, %v453_v33 }
  0x2a   : > { %3086 = vmatpush3.bf16.xpose.msra.mxu0 %v774_v6  ;;  %v3316_v39 = vld [vmem:[%s3702_s10 + $0x60] sm:$0xff]   ;;  %617 = vst.msk [vmem:[#allocation5 + $0x40] sm:$0xff] %vm416_vm0, %v2955_v30  ;;  %v486_v40 = vmul.bf16 1040203264, %v454_v37  ;;  %v455_v41 = vld [vmem:[%s3724_s21 + $0x18] sm:$0xf] }
  0x2b   : > { %3118 = vmatpush3.bf16.xpose.msra.mxu1 %v959_v8  ;;  %3213 = vmatprep.subr.msk.bf16.mxu0 %vm416_vm0, %v3311_v7  ;;  %v456_v42 = vld [vmem:[%s3724_s21 + $0x1c] sm:$0xf]  ;;  %610 = vst.msk [vmem:[#allocation5 + $0x8] sm:$0xff] %vm416_vm0, %v2948_v35  ;;  %v2956_v43 = vcombine.low %v499_v32, %v500_v36  ;;  %v487_v44 = vmul.bf16 1040203264, %v455_v41  ;;  %v783_v6 = vsel %vm416_vm0, %v3315_v34, 0 }
  0x2c   : > { %3221 = vmatprep.subr.msk.bf16.mxu1 %vm416_vm0, %v3312_v9  ;;  %v488_v45 = vmul.bf16 1040203264, %v456_v42  ;;  %v469_v46 = vld [vmem:[%s3724_s21 + $0x50] sm:$0xf]  ;;  %v2949_v47 = vcombine.low %v485_v38, %v486_v40  ;;  %v470_v48 = vld [vmem:[%s3724_s21 + $0x54] sm:$0xf] }
  0x2d   : > { %v501_v49 = vmul.bf16 1040203264, %v469_v46  ;;  %v471_v50 = vld [vmem:[%s3724_s21 + $0x58] sm:$0xf]  ;;  %618 = vst.msk [vmem:[#allocation5 + $0x48] sm:$0xff] %vm416_vm0, %v2956_v43  ;;  %v3317_v7 = vld [vmem:[%s3702_s10 + $0x28] sm:$0xff]  }
  0x2e   : > { %v2950_v51 = vcombine.low %v487_v44, %v488_v45  ;;  %v502_v52 = vmul.bf16 1040203264, %v470_v48  ;;  %v472_v53 = vld [vmem:[%s3724_s21 + $0x5c] sm:$0xf]  ;;  %v503_v54 = vmul.bf16 1040203264, %v471_v50 }
  0x2f   : > { %611 = vst.msk [vmem:[#allocation5 + $0x10] sm:$0xff] %vm416_vm0, %v2949_v47  ;;  %v504_v55 = vmul.bf16 1040203264, %v472_v53  ;;  %v457_v56 = vld [vmem:[%s3724_s21 + $0x20] sm:$0xf]  ;;  %v968_v14 = vsel %vm416_vm0, %v3316_v39, 0 }
  0x30   : > { %v458_v57 = vld [vmem:[%s3724_s21 + $0x24] sm:$0xf]  ;;  %612 = vst.msk [vmem:[#allocation5 + $0x18] sm:$0xff] %vm416_vm0, %v2950_v51  ;;  %v2957_v59 = vcombine.low %v501_v49, %v502_v52  ;;  %v489_v60 = vmul.bf16 1040203264, %v457_v56  ;;  %v786_v35 = vsel %vm416_vm0, %v3317_v7, 0 }
  0x31   : > { %v625_v58 = vld [vmem:[#allocation5] sm:$0xff]  ;;  %v490_v61 = vmul.bf16 1040203264, %v458_v57  ;;  %v2958_v62 = vcombine.low %v503_v54, %v504_v55  ;;  %v459_v63 = vld [vmem:[%s3724_s21 + $0x28] sm:$0xf]  ;;  %v3319_v36 = vld [vmem:[%s3702_s10 + $0x30] sm:$0xff]  }
  0x32   : > { %3088 = vmatpush3.bf16.xpose.msra.mxu0 %v777_v12  ;;  %3099 = vmatprep.mubr.msk.bf16.mxu0 %vm416_vm0, %v625_v58  ;;  %v460_v0 = vld [vmem:[%s3724_s21 + $0x2c] sm:$0xf]  ;;  %v473_v1 = vld [vmem:[%s3724_s21 + $0x60] sm:$0xf]  ;;  %619 = vst.msk [vmem:[#allocation5 + $0x50] sm:$0xff] %vm416_vm0, %v2957_v59  ;;  %v3320_v40 = vld [vmem:[%s3702_s10 + $0x70] sm:$0xff]  }
  0x33   : > { %3120 = vmatpush3.bf16.xpose.msra.mxu1 %v962_v13  ;;  %3214 = vmatprep.subr.msk.bf16.mxu0 %vm416_vm0, %v3313_v10  ;;  %v633_v2 = vld [vmem:[#allocation5 + $0x40] sm:$0xff]  ;;  %v2951_v3 = vcombine.low %v489_v60, %v490_v61  ;;  %v491_v4 = vmul.bf16 1040203264, %v459_v63  ;;  %v492_v5 = vmul.bf16 1040203264, %v460_v0  ;;  %620 = vst.msk [vmem:[#allocation5 + $0x58] sm:$0xff] %vm416_vm0, %v2958_v62 }
  0x34   : > { %3222 = vmatprep.subr.msk.bf16.mxu1 %vm416_vm0, %v3314_v11  ;;  %3131 = vmatprep.mubr.msk.bf16.mxu1 %vm416_vm0, %v633_v2  ;;  %v474_v8 = vld [vmem:[%s3724_s21 + $0x64] sm:$0xf]  ;;  %v505_v9 = vmul.bf16 1040203264, %v473_v1  ;;  %v475_v12 = vld [vmem:[%s3724_s21 + $0x68] sm:$0xf] }
  0x35   : > { %613 = vst.msk [vmem:[#allocation5 + $0x20] sm:$0xff] %vm416_vm0, %v2951_v3  ;;  %v2952_v10 = vcombine.low %v491_v4, %v492_v5  ;;  %v506_v11 = vmul.bf16 1040203264, %v474_v8  ;;  %v476_v13 = vld [vmem:[%s3724_s21 + $0x6c] sm:$0xf]  ;;  %v789_v44 = vsel %vm416_vm0, %v3319_v36, 0 }
  0x36   : > { %v461_v19 = vld [vmem:[%s3724_s21 + $0x30] sm:$0xf]  ;;  %v462_v20 = vld [vmem:[%s3724_s21 + $0x34] sm:$0xf]  ;;  %v463_v24 = vld [vmem:[%s3724_s21 + $0x38] sm:$0xf] }
  0x37   : > { %614 = vst.msk [vmem:[#allocation5 + $0x28] sm:$0xff] %vm416_vm0, %v2952_v10  ;;  %v2959_v18 = vcombine.low %v505_v9, %v506_v11  ;;  %v493_v22 = vmul.bf16 1040203264, %v461_v19  ;;  %v494_v23 = vmul.bf16 1040203264, %v462_v20  ;;  %v3321_v45 = vld [vmem:[%s3702_s10 + $0x38] sm:$0xff]  }
  0x38   : > { %v464_v25 = vld [vmem:[%s3724_s21 + $0x3c] sm:$0xf]  ;;  %v477_v26 = vld [vmem:[%s3724_s21 + $0x70] sm:$0xf]  ;;  %v495_v28 = vmul.bf16 1040203264, %v463_v24 }
  0x39   : > { %621 = vst.msk [vmem:[#allocation5 + $0x60] sm:$0xff] %vm416_vm0, %v2959_v18  ;;  %v2953_v27 = vcombine.low %v493_v22, %v494_v23  ;;  %v496_v29 = vmul.bf16 1040203264, %v464_v25  ;;  %v478_v30 = vld [vmem:[%s3724_s21 + $0x74] sm:$0xf]  ;;  %v974_v46 = vsel %vm416_vm0, %v3320_v40, 0 }
  0x3a   : > { %3090 = vmatpush3.bf16.xpose.msra.mxu0 %v780_v16  ;;  %v507_v16 = vmul.bf16 1040203264, %v475_v12  ;;  %v509_v31 = vmul.bf16 1040203264, %v477_v26  ;;  %v510_v33 = vmul.bf16 1040203264, %v478_v30 }
  0x3b   : > { %3122 = vmatpush3.bf16.xpose.msra.mxu1 %v965_v17  ;;  %3215 = vmatprep.subr.msk.bf16.mxu0 %vm416_vm0, %v3315_v34  ;;  %v508_v17 = vmul.bf16 1040203264, %v476_v13  ;;  %615 = vst.msk [vmem:[#allocation5 + $0x30] sm:$0xff] %vm416_vm0, %v2953_v27  ;;  %v2954_v32 = vcombine.low %v495_v28, %v496_v29  ;;  %v479_v34 = vld [vmem:[%s3724_s21 + $0x78] sm:$0xf]  ;;  %v792_v48 = vsel %vm416_vm0, %v3321_v45, 0 }
  0x3c   : > { %3223 = vmatprep.subr.msk.bf16.mxu1 %vm416_vm0, %v3316_v39  ;;  %v480_v37 = vld [vmem:[%s3724_s21 + $0x7c] sm:$0xf]  ;;  %v511_v38 = vmul.bf16 1040203264, %v479_v34  ;;  %v971_v39 = vsel %vm416_vm0, %v3318_v15, 0  ;;  %v2961_v41 = vcombine.low %v509_v31, %v510_v33  ;;  %v626_v50 = vld [vmem:[#allocation5 + $0x8] sm:$0xff] }
  0x3d   : > { %v2960_v21 = vcombine.low %v507_v16, %v508_v17  ;;  %616 = vst.msk [vmem:[#allocation5 + $0x38] sm:$0xff] %vm416_vm0, %v2954_v32  ;;  %v512_v42 = vmul.bf16 1040203264, %v480_v37  ;;  %v3322_v47 = vld [vmem:[%s3702_s10 + $0x78] sm:$0xff]   ;;  %v634_v51 = vld [vmem:[#allocation5 + $0x48] sm:$0xff]  ;;  %v627_v52 = vld [vmem:[#allocation5 + $0x10] sm:$0xff] }
  0x3e   : > { %623 = vst.msk [vmem:[#allocation5 + $0x70] sm:$0xff] %vm416_vm0, %v2961_v41  ;;  %v977_v49 = vsel %vm416_vm0, %v3322_v47, 0  ;;  %v635_v53 = vld [vmem:[#allocation5 + $0x50] sm:$0xff]  ;;  %v628_v54 = vld [vmem:[#allocation5 + $0x18] sm:$0xff]  ;;  %v629_v56 = vld [vmem:[#allocation5 + $0x20] sm:$0xff]  ;;  %v3595_v0 = vmov -inf  }
  0x3f   : > { %622 = vst.msk [vmem:[#allocation5 + $0x68] sm:$0xff] %vm416_vm0, %v2960_v21  ;;  %v2962_v43 = vcombine.low %v511_v38, %v512_v42  ;;  %v636_v55 = vld [vmem:[#allocation5 + $0x58] sm:$0xff]  ;;  %v630_v58 = vld [vmem:[#allocation5 + $0x28] sm:$0xff]  ;;  %v3596_v20 = vmov 0   ;;  %v3597_v31 = vmov 0.0   ;;  %v3323_v37 = vld [vmem:[%s4084_s28 + $0x40] sm:$0xff]  }
  0x40   : > { %v637_v57 = vld [vmem:[#allocation5 + $0x60] sm:$0xff]  ;;  %370 = vst.msk [vmem:[#allocation2 + $0x90] sm:$0xff] %vm351_vm1, %v3595_v0  ;;  %352 = vst.msk [vmem:[#allocation2] sm:$0xff] %vm351_vm1, %v3595_v0  ;;  %3306 = vset.pattern.permute.xlu0 %v3596_v20  ;;  %3305 = vset.pattern.permute.xlu1 %v3596_v20  ;;  %s2798_s9 = sshll.u32 %s4800_s6, 4  ;;  %s3013_s10 = sshll.u32 %s2795_s8, 7  ;;  %s4844_s9 = int_to_ptr.vmem [resolvable:$true] %s2798_s9 }
  0x41   : > { %624 = vst.msk [vmem:[#allocation5 + $0x78] sm:$0xff] %vm416_vm0, %v2962_v43  ;;  %417 = vst.msk [vmem:[#allocation4] sm:$0xff] %vm416_vm0, %v3597_v31  ;;  %s4850_s11 = scalar_lea.hbm %s4911_s3, %s3013_s10  ;;  %s3499_s21 = scalar_lea.vmem %s4844_s9, 2048 }
  0x42   : > { %3092 = vmatpush3.bf16.xpose.msra.mxu0 %v783_v6  ;;  %v631_v60 = vld [vmem:[#allocation5 + $0x30] sm:$0xff]  ;;  %353 = vst.msk [vmem:[#allocation2 + $0x8] sm:$0xff] %vm351_vm1, %v3595_v0  ;;  %354 = vst.msk [vmem:[#allocation2 + $0x10] sm:$0xff] %vm351_vm1, %v3595_v0  ;;  %p3500_p13 = scmp.ne.s32.totalorder %s4844_s9, %s3499_s21  ;;  %p3506_p2 = scmp.lt.s32.totalorder %s4844_s9, %s3504_s27 }
  0x43   : > { %3124 = vmatpush3.bf16.xpose.msra.mxu1 %v968_v14  ;;  %3216 = vmatprep.subr.msk.bf16.mxu0 %vm416_vm0, %v3317_v7  ;;  %355 = vst.msk [vmem:[#allocation2 + $0x18] sm:$0xff] %vm351_vm1, %v3595_v0  ;;  %356 = vst.msk [vmem:[#allocation2 + $0x20] sm:$0xff] %vm351_vm1, %v3595_v0 }
  0x44   : > { %3224 = vmatprep.subr.msk.bf16.mxu1 %vm416_vm0, %v3318_v15  ;;  %v632_v62 = vld [vmem:[#allocation5 + $0x38] sm:$0xff]  ;;  %357 = vst.msk [vmem:[#allocation2 + $0x28] sm:$0xff] %vm351_vm1, %v3595_v0  ;;  %358 = vst.msk [vmem:[#allocation2 + $0x30] sm:$0xff] %vm351_vm1, %v3595_v0  ;;  %p3501_p0 = pnand %p3500_p13, %p3674_p3 }
  0x45   : > { %v639_v61 = vld [vmem:[#allocation5 + $0x70] sm:$0xff]  ;;  %359 = vst.msk [vmem:[#allocation2 + $0x38] sm:$0xff] %vm351_vm1, %v3595_v0  ;;  %360 = vst.msk [vmem:[#allocation2 + $0x40] sm:$0xff] %vm351_vm1, %v3595_v0 }
  0x46   : > { %v638_v59 = vld [vmem:[#allocation5 + $0x68] sm:$0xff]  ;;  %361 = vst.msk [vmem:[#allocation2 + $0x48] sm:$0xff] %vm351_vm1, %v3595_v0  ;;  %362 = vst.msk [vmem:[#allocation2 + $0x50] sm:$0xff] %vm351_vm1, %v3595_v0  ;;  %p3502_p1 = pneg %p3501_p0 }
  0x47   : > { %363 = vst.msk [vmem:[#allocation2 + $0x58] sm:$0xff] %vm351_vm1, %v3595_v0  ;;  %364 = vst.msk [vmem:[#allocation2 + $0x60] sm:$0xff] %vm351_vm1, %v3595_v0  ;;  %v4094_v42 = vld [vmem:[#allocation2] sm:$0xff] }
  0x48   : > { %v640_v63 = vld [vmem:[#allocation5 + $0x78] sm:$0xff]  ;;  %365 = vst.msk [vmem:[#allocation2 + $0x68] sm:$0xff] %vm351_vm1, %v3595_v0  ;;  %366 = vst.msk [vmem:[#allocation2 + $0x70] sm:$0xff] %vm351_vm1, %v3595_v0 }
  0x49   : > { %367 = vst.msk [vmem:[#allocation2 + $0x78] sm:$0xff] %vm351_vm1, %v3595_v0  ;;  %368 = vst.msk [vmem:[#allocation2 + $0x80] sm:$0xff] %vm351_vm1, %v3595_v0 }
  0x4a   : > { %3094 = vmatpush3.bf16.xpose.msra.mxu0 %v786_v35  ;;  %369 = vst.msk [vmem:[#allocation2 + $0x88] sm:$0xff] %vm351_vm1, %v3595_v0  ;;  %371 = vst.msk [vmem:[#allocation2 + $0x98] sm:$0xff] %vm351_vm1, %v3595_v0  ;;  %v4078_v35 = vld [vmem:[#allocation2 + $0x10] sm:$0xff] }
  0x4b   : > { %3126 = vmatpush3.bf16.xpose.msra.mxu1 %v971_v39  ;;  %3217 = vmatprep.subr.msk.bf16.mxu0 %vm416_vm0, %v3319_v36  ;;  %372 = vst.msk [vmem:[#allocation2 + $0xa0] sm:$0xff] %vm351_vm1, %v3595_v0  ;;  %373 = vst.msk [vmem:[#allocation2 + $0xa8] sm:$0xff] %vm351_vm1, %v3595_v0  ;;  %v4086_v36 = vld [vmem:[#allocation2 + $0x90] sm:$0xff]  ;;  %v4089_v39 = vld [vmem:[#allocation2 + $0x18] sm:$0xff] }
  0x4c   : > { %3225 = vmatprep.subr.msk.bf16.mxu1 %vm416_vm0, %v3320_v40  ;;  %374 = vst.msk [vmem:[#allocation2 + $0xb0] sm:$0xff] %vm351_vm1, %v3595_v0  ;;  %375 = vst.msk [vmem:[#allocation2 + $0xb8] sm:$0xff] %vm351_vm1, %v3595_v0 }
  0x4d   : > { %376 = vst.msk [vmem:[#allocation2 + $0xc0] sm:$0xff] %vm351_vm1, %v3595_v0  ;;  %377 = vst.msk [vmem:[#allocation2 + $0xc8] sm:$0xff] %vm351_vm1, %v3595_v0 }
  0x4e   : > { %378 = vst.msk [vmem:[#allocation2 + $0xd0] sm:$0xff] %vm351_vm1, %v3595_v0  ;;  %379 = vst.msk [vmem:[#allocation2 + $0xd8] sm:$0xff] %vm351_vm1, %v3595_v0 }
  0x4f   : > { %380 = vst.msk [vmem:[#allocation2 + $0xe0] sm:$0xff] %vm351_vm1, %v3595_v0  ;;  %381 = vst.msk [vmem:[#allocation2 + $0xe8] sm:$0xff] %vm351_vm1, %v3595_v0 }
  0x50   : > { %382 = vst.msk [vmem:[#allocation2 + $0xf0] sm:$0xff] %vm351_vm1, %v3595_v0  ;;  %383 = vst.msk [vmem:[#allocation2 + $0xf8] sm:$0xff] %vm351_vm1, %v3595_v0 }
  0x51   : > { %384 = vst.msk [vmem:[#allocation3] sm:$0xff] %vm351_vm1, %v3597_v31  ;;  %385 = vst.msk [vmem:[#allocation3 + $0x8] sm:$0xff] %vm351_vm1, %v3597_v31 }
  0x52   : > { %3096 = vmatpush3.bf16.xpose.msra.mxu0 %v789_v44  ;;  %386 = vst.msk [vmem:[#allocation3 + $0x10] sm:$0xff] %vm351_vm1, %v3597_v31  ;;  %387 = vst.msk [vmem:[#allocation3 + $0x18] sm:$0xff] %vm351_vm1, %v3597_v31 }
  0x53   : > { %3128 = vmatpush3.bf16.xpose.msra.mxu1 %v974_v46  ;;  %3218 = vmatprep.subr.msk.bf16.mxu0 %vm416_vm0, %v3321_v45  ;;  %388 = vst.msk [vmem:[#allocation3 + $0x20] sm:$0xff] %vm351_vm1, %v3597_v31  ;;  %389 = vst.msk [vmem:[#allocation3 + $0x28] sm:$0xff] %vm351_vm1, %v3597_v31  ;;  %v3324_v45 = vld [vmem:[%s4084_s28] sm:$0xff]   ;;  %v3325_v46 = vld [vmem:[%s4084_s28 + $0x48] sm:$0xff]  }
  0x54   : > { %3226 = vmatprep.subr.msk.bf16.mxu1 %vm416_vm0, %v3322_v47  ;;  %390 = vst.msk [vmem:[#allocation3 + $0x30] sm:$0xff] %vm351_vm1, %v3597_v31  ;;  %391 = vst.msk [vmem:[#allocation3 + $0x38] sm:$0xff] %vm351_vm1, %v3597_v31  ;;  %v4189_v47 = vld [vmem:[#allocation2 + $0x28] sm:$0xff] }
  0x55   : > { %392 = vst.msk [vmem:[#allocation3 + $0x40] sm:$0xff] %vm351_vm1, %v3597_v31  ;;  %393 = vst.msk [vmem:[#allocation3 + $0x48] sm:$0xff] %vm351_vm1, %v3597_v31 }
  0x56   : > { %394 = vst.msk [vmem:[#allocation3 + $0x50] sm:$0xff] %vm351_vm1, %v3597_v31  ;;  %395 = vst.msk [vmem:[#allocation3 + $0x58] sm:$0xff] %vm351_vm1, %v3597_v31 }
  0x57   : > { %396 = vst.msk [vmem:[#allocation3 + $0x60] sm:$0xff] %vm351_vm1, %v3597_v31  ;;  %397 = vst.msk [vmem:[#allocation3 + $0x68] sm:$0xff] %vm351_vm1, %v3597_v31 }
  0x58   : > { %398 = vst.msk [vmem:[#allocation3 + $0x70] sm:$0xff] %vm351_vm1, %v3597_v31  ;;  %399 = vst.msk [vmem:[#allocation3 + $0x78] sm:$0xff] %vm351_vm1, %v3597_v31 }
  0x59   : > { %400 = vst.msk [vmem:[#allocation3 + $0x80] sm:$0xff] %vm351_vm1, %v3597_v31  ;;  %401 = vst.msk [vmem:[#allocation3 + $0x88] sm:$0xff] %vm351_vm1, %v3597_v31 }
  0x5a   : > { %3098 = vmatpush3.bf16.xpose.msra.mxu0 %v792_v48  ;;  %402 = vst.msk [vmem:[#allocation3 + $0x90] sm:$0xff] %vm351_vm1, %v3597_v31  ;;  %403 = vst.msk [vmem:[#allocation3 + $0x98] sm:$0xff] %vm351_vm1, %v3597_v31 }
  0x5b   : > { %3130 = vmatpush3.bf16.xpose.msra.mxu1 %v977_v49  ;;  %404 = vst.msk [vmem:[#allocation3 + $0xa0] sm:$0xff] %vm351_vm1, %v3597_v31  ;;  %405 = vst.msk [vmem:[#allocation3 + $0xa8] sm:$0xff] %vm351_vm1, %v3597_v31  ;;  %3147 = vmatprep.subr.bf16.mxu0 %v3324_v45 }
  0x5c   : > { %406 = vst.msk [vmem:[#allocation3 + $0xb0] sm:$0xff] %vm351_vm1, %v3597_v31  ;;  %407 = vst.msk [vmem:[#allocation3 + $0xb8] sm:$0xff] %vm351_vm1, %v3597_v31  ;;  %3179 = vmatprep.subr.bf16.mxu1 %v3323_v37 }
  0x5d   : > { %408 = vst.msk [vmem:[#allocation3 + $0xc0] sm:$0xff] %vm351_vm1, %v3597_v31  ;;  %409 = vst.msk [vmem:[#allocation3 + $0xc8] sm:$0xff] %vm351_vm1, %v3597_v31 }
  0x5e   : > { %410 = vst.msk [vmem:[#allocation3 + $0xd0] sm:$0xff] %vm351_vm1, %v3597_v31  ;;  %411 = vst.msk [vmem:[#allocation3 + $0xd8] sm:$0xff] %vm351_vm1, %v3597_v31 }
  0x5f   : > { %412 = vst.msk [vmem:[#allocation3 + $0xe0] sm:$0xff] %vm351_vm1, %v3597_v31  ;;  %413 = vst.msk [vmem:[#allocation3 + $0xe8] sm:$0xff] %vm351_vm1, %v3597_v31 }
  0x60   : > { %414 = vst.msk [vmem:[#allocation3 + $0xf0] sm:$0xff] %vm351_vm1, %v3597_v31  ;;  %415 = vst.msk [vmem:[#allocation3 + $0xf8] sm:$0xff] %vm351_vm1, %v3597_v31 }
  0x61   : > { %3100 = vmatmul.mubr.msk.bf16.vlgmr.msra.gmra.mrb[0].mxu0 %vm416_vm0, %v626_v50  ;;  %418 = vst.msk [vmem:[#allocation4 + $0x8] sm:$0xff] %vm416_vm0, %v3597_v31  ;;  %419 = vst.msk [vmem:[#allocation4 + $0x10] sm:$0xff] %vm416_vm0, %v3597_v31 }
  0x62   : > { %3132 = vmatmul.mubr.msk.bf16.vlgmr.msra.gmra.mrb[0].mxu1 %vm416_vm0, %v634_v51  ;;  %3103 = vmatprep.mubr.msk.bf16.mxu0 %vm416_vm0, %v627_v52  ;;  %420 = vst.msk [vmem:[#allocation4 + $0x18] sm:$0xff] %vm416_vm0, %v3597_v31  ;;  %421 = vst.msk [vmem:[#allocation4 + $0x20] sm:$0xff] %vm416_vm0, %v3597_v31  ;;  %v4113_v51 = vld [vmem:[#allocation2 + $0x80] sm:$0xff] }
  0x63   : > { %3135 = vmatprep.mubr.msk.bf16.mxu1 %vm416_vm0, %v635_v53  ;;  %422 = vst.msk [vmem:[#allocation4 + $0x28] sm:$0xff] %vm416_vm0, %v3597_v31  ;;  %423 = vst.msk [vmem:[#allocation4 + $0x30] sm:$0xff] %vm416_vm0, %v3597_v31  ;;  %3180 = vmatpush3.bf16.msra.mxu1 %v3323_v37  ;;  %v4118_v53 = vld [vmem:[#allocation2 + $0x98] sm:$0xff]  ;;  %v3328_v37 = vld [vmem:[%s4084_s28 + $0x10] sm:$0xff]  }
  0x64   : > { %424 = vst.msk [vmem:[#allocation4 + $0x38] sm:$0xff] %vm416_vm0, %v3597_v31  ;;  %425 = vst.msk [vmem:[#allocation4 + $0x40] sm:$0xff] %vm416_vm0, %v3597_v31  ;;  %3181 = vmatprep.subr.bf16.mxu1 %v3325_v46  ;;  %3148 = vmatpush3.bf16.msra.mxu0 %v3324_v45  ;;  %v4156_v45 = vld [vmem:[#allocation2 + $0x38] sm:$0xff] }
  0x65   : > { %426 = vst.msk [vmem:[#allocation4 + $0x48] sm:$0xff] %vm416_vm0, %v3597_v31  ;;  %427 = vst.msk [vmem:[#allocation4 + $0x50] sm:$0xff] %vm416_vm0, %v3597_v31 }
  0x66   : > { %428 = vst.msk [vmem:[#allocation4 + $0x58] sm:$0xff] %vm416_vm0, %v3597_v31  ;;  %429 = vst.msk [vmem:[#allocation4 + $0x60] sm:$0xff] %vm416_vm0, %v3597_v31 }
  0x67   : > { %430 = vst.msk [vmem:[#allocation4 + $0x68] sm:$0xff] %vm416_vm0, %v3597_v31  ;;  %431 = vst.msk [vmem:[#allocation4 + $0x70] sm:$0xff] %vm416_vm0, %v3597_v31  ;;  %3182 = vmatpush3.bf16.msra.mxu1 %v3325_v46  ;;  %v4160_v46 = vld [vmem:[#allocation2 + $0x30] sm:$0xff] }
  0x68   : > { %432 = vst.msk [vmem:[#allocation4 + $0x78] sm:$0xff] %vm416_vm0, %v3597_v31  ;;  %433 = vst.msk [vmem:[#allocation4 + $0x80] sm:$0xff] %vm416_vm0, %v3597_v31 }
  0x69   : > { %3104 = vmatmul.mubr.msk.bf16.gmra.mrb[4].mxu0 %vm416_vm0, %v628_v54  ;;  %434 = vst.msk [vmem:[#allocation4 + $0x88] sm:$0xff] %vm416_vm0, %v3597_v31  ;;  %435 = vst.msk [vmem:[#allocation4 + $0x90] sm:$0xff] %vm416_vm0, %v3597_v31 }
  0x6a   : > { %3136 = vmatmul.mubr.msk.bf16.gmra.mrb[4].mxu1 %vm416_vm0, %v636_v55  ;;  %3107 = vmatprep.mubr.msk.bf16.mxu0 %vm416_vm0, %v629_v56  ;;  %436 = vst.msk [vmem:[#allocation4 + $0x98] sm:$0xff] %vm416_vm0, %v3597_v31  ;;  %437 = vst.msk [vmem:[#allocation4 + $0xa0] sm:$0xff] %vm416_vm0, %v3597_v31  ;;  %v3326_v55 = vld [vmem:[%s4084_s28 + $0x8] sm:$0xff]   ;;  %v3327_v56 = vld [vmem:[%s4084_s28 + $0x50] sm:$0xff]  }
  0x6b   : > { %3139 = vmatprep.mubr.msk.bf16.mxu1 %vm416_vm0, %v637_v57  ;;  %438 = vst.msk [vmem:[#allocation4 + $0xa8] sm:$0xff] %vm416_vm0, %v3597_v31  ;;  %439 = vst.msk [vmem:[#allocation4 + $0xb0] sm:$0xff] %vm416_vm0, %v3597_v31  ;;  %3149 = vmatprep.subr.bf16.mxu0 %v3326_v55 }
  0x6c   : > { %440 = vst.msk [vmem:[#allocation4 + $0xb8] sm:$0xff] %vm416_vm0, %v3597_v31  ;;  %441 = vst.msk [vmem:[#allocation4 + $0xc0] sm:$0xff] %vm416_vm0, %v3597_v31  ;;  %3183 = vmatprep.subr.bf16.mxu1 %v3327_v56  ;;  %3150 = vmatpush3.bf16.msra.mxu0 %v3326_v55 }
  0x6d   : > { %442 = vst.msk [vmem:[#allocation4 + $0xc8] sm:$0xff] %vm416_vm0, %v3597_v31  ;;  %443 = vst.msk [vmem:[#allocation4 + $0xd0] sm:$0xff] %vm416_vm0, %v3597_v31  ;;  %3184 = vmatpush3.bf16.msra.mxu1 %v3327_v56  ;;  %3151 = vmatprep.subr.bf16.mxu0 %v3328_v37  ;;  %v4172_v56 = vld [vmem:[#allocation2 + $0xb8] sm:$0xff] }
  0x6e   : > { %444 = vst.msk [vmem:[#allocation4 + $0xd8] sm:$0xff] %vm416_vm0, %v3597_v31  ;;  %445 = vst.msk [vmem:[#allocation4 + $0xe0] sm:$0xff] %vm416_vm0, %v3597_v31 }
  0x6f   : > { %446 = vst.msk [vmem:[#allocation4 + $0xe8] sm:$0xff] %vm416_vm0, %v3597_v31  ;;  %447 = vst.msk [vmem:[#allocation4 + $0xf0] sm:$0xff] %vm416_vm0, %v3597_v31 }
  0x70   : > { %448 = vst.msk [vmem:[#allocation4 + $0xf8] sm:$0xff] %vm416_vm0, %v3597_v31  ;;  %3152 = vmatpush3.bf16.msra.mxu0 %v3328_v37  ;;  %4974 = vst [vmem:[#allocation33_spill] sm:$0xff] %v4172_v56 }
  0x71   : > { %3108 = vmatmul.mubr.msk.bf16.gmra.mrb[8].mxu0 %vm416_vm0, %v630_v58 }
  0x72   : > { %3140 = vmatmul.mubr.msk.bf16.gmra.mrb[8].mxu1 %vm416_vm0, %v638_v59  ;;  %3111 = vmatprep.mubr.msk.bf16.mxu0 %vm416_vm0, %v631_v60  ;;  %v4134_v60 = vld [vmem:[#allocation2 + $0x88] sm:$0xff] }
  0x73   : > { %3143 = vmatprep.mubr.msk.bf16.mxu1 %vm416_vm0, %v639_v61  ;;  %v3333_v61 = vld [vmem:[%s4084_s28 + $0x68] sm:$0xff]  }
  0x79   : > { %3112 = vmatmul.mubr.msk.bf16.gmra.mrb[12].mxu0 %vm416_vm0, %v632_v62  ;;  %v4140_v62 = vld [vmem:[#allocation2 + $0x8] sm:$0xff] }
  0x7a   : > { %3144 = vmatmul.mubr.msk.bf16.gmra.mrb[12].mxu1 %vm416_vm0, %v640_v63  ;;  %v3332_v63 = vld [vmem:[%s4084_s28 + $0x20] sm:$0xff]  }
 0x134   : > { %v3854_v1 = vpop.f32.mrb[0].mxu0 }
 0x135   : > { %v3856_v2 = vpop.f32.mrb[0].mxu1  ;;  %1112 = vmax.xlane.f32.xlu1 %v3854_v1  ;;  %v3859_v3 = vpop.f32.mrb[1].mxu0 }
 0x136   : > { %1144 = vmax.xlane.f32.xlu0 %v3856_v2  ;;  %v3862_v4 = vpop.f32.mrb[1].mxu1  ;;  %v3864_v5 = vpop.f32.mrb[2].mxu0 }
 0x137   : > { %v3866_v6 = vpop.f32.mrb[2].mxu1  ;;  %v3868_v7 = vpop.f32.mrb[3].mxu0 }
 0x138   : > { %v3870_v8 = vpop.f32.mrb[3].mxu1 }
 0x139   : > { %1114 = vmax.xlane.f32.xlu1 %v3864_v5 }
 0x13a   : > { %1108 = vmax.xlane.f32.xlu0 %v3859_v3 }
 0x13c   : > { %v3874_v9 = vpop.f32.mrb[4].mxu0 }
 0x13d   : > { %4950 = vst [vmem:[#allocation9_spill] sm:$0xff] %v3874_v9  ;;  %1146 = vmax.xlane.f32.xlu1 %v3866_v6  ;;  %v3877_v10 = vpop.f32.mrb[5].mxu0  ;;  %v3879_v11 = vpop.f32.mrb[4].mxu1 }
 0x13e   : > { %4951 = vst [vmem:[#allocation10_spill] sm:$0xff] %v3877_v10  ;;  %4952 = vst [vmem:[#allocation11_spill] sm:$0xff] %v3879_v11  ;;  %1140 = vmax.xlane.f32.xlu0 %v3862_v4  ;;  %v3882_v12 = vpop.f32.mrb[6].mxu0  ;;  %v3884_v13 = vpop.f32.mrb[5].mxu1 }
 0x13f   : > { %4953 = vst [vmem:[#allocation12_spill] sm:$0xff] %v3882_v12  ;;  %4954 = vst [vmem:[#allocation13_spill] sm:$0xff] %v3884_v13  ;;  %v3886_v14 = vpop.f32.mrb[7].mxu0  ;;  %v3888_v15 = vpop.f32.mrb[6].mxu1 }
 0x140   : > { %4955 = vst [vmem:[#allocation14_spill] sm:$0xff] %v3886_v14  ;;  %4956 = vst [vmem:[#allocation15_spill] sm:$0xff] %v3888_v15  ;;  %v3890_v16 = vpop.f32.mrb[7].mxu1 }
 0x141   : > { %4957 = vst [vmem:[#allocation16_spill] sm:$0xff] %v3890_v16  ;;  %1142 = vmax.xlane.f32.xlu1 %v3870_v8 }
 0x142   : > { %1110 = vmax.xlane.f32.xlu0 %v3868_v7 }
 0x144   : > { %v3894_v17 = vpop.f32.mrb[8].mxu0 }
 0x145   : > { %4958 = vst [vmem:[#allocation17_spill] sm:$0xff] %v3894_v17  ;;  %1122 = vmax.xlane.f32.xlu1 %v3882_v12  ;;  %v3897_v18 = vpop.f32.mrb[9].mxu0  ;;  %v3899_v19 = vpop.f32.mrb[8].mxu1 }
 0x146   : > { %4959 = vst [vmem:[#allocation18_spill] sm:$0xff] %v3897_v18  ;;  %4960 = vst [vmem:[#allocation19_spill] sm:$0xff] %v3899_v19  ;;  %1120 = vmax.xlane.f32.xlu0 %v3874_v9  ;;  %v3902_v21 = vpop.f32.mrb[10].mxu0  ;;  %v3904_v22 = vpop.f32.mrb[9].mxu1  ;;  %v4337_v9 = vld [vmem:[#allocation2 + $0x68] sm:$0xff] }
 0x147   : > { %4961 = vst [vmem:[#allocation20_spill] sm:$0xff] %v3902_v21  ;;  %4962 = vst [vmem:[#allocation21_spill] sm:$0xff] %v3904_v22  ;;  %v3906_v23 = vpop.f32.mrb[10].mxu1  ;;  %v3908_v24 = vpop.f32.mrb[11].mxu0 }
 0x148   : > { %4963 = vst [vmem:[#allocation22_spill] sm:$0xff] %v3906_v23  ;;  %4964 = vst [vmem:[#allocation23_spill] sm:$0xff] %v3908_v24  ;;  %v3910_v25 = vpop.f32.mrb[11].mxu1 }
 0x149   : > { %4965 = vst [vmem:[#allocation24_spill] sm:$0xff] %v3910_v25  ;;  %1154 = vmax.xlane.f32.xlu1 %v3888_v15 }
 0x14a   : > { %1152 = vmax.xlane.f32.xlu0 %v3879_v11 }
 0x14c   : > { %v3914_v26 = vpop.f32.mrb[12].mxu0 }
 0x14d   : > { %4966 = vst [vmem:[#allocation25_spill] sm:$0xff] %v3914_v26  ;;  %1118 = vmax.xlane.f32.xlu1 %v3886_v14  ;;  %v3917_v27 = vpop.f32.mrb[13].mxu0  ;;  %v3919_v28 = vpop.f32.mrb[12].mxu1  ;;  %v4324_v14 = vld [vmem:[#allocation2 + $0xf0] sm:$0xff] }
 0x14e   : > { %4967 = vst [vmem:[#allocation26_spill] sm:$0xff] %v3917_v27  ;;  %4968 = vst [vmem:[#allocation27_spill] sm:$0xff] %v3919_v28  ;;  %1116 = vmax.xlane.f32.xlu0 %v3877_v10  ;;  %v3922_v29 = vpop.f32.mrb[14].mxu0  ;;  %v3924_v30 = vpop.f32.mrb[13].mxu1 }
 0x14f   : > { %4969 = vst [vmem:[#allocation28_spill] sm:$0xff] %v3922_v29  ;;  %4970 = vst [vmem:[#allocation29_spill] sm:$0xff] %v3924_v30  ;;  %v4054_v32 = vpop.f32.mrb[14].mxu1  ;;  %v4056_v33 = vpop.f32.mrb[15].mxu0 }
 0x150   : > { %4971 = vst [vmem:[#allocation30_spill] sm:$0xff] %v4054_v32  ;;  %4972 = vst [vmem:[#allocation31_spill] sm:$0xff] %v4056_v33  ;;  %v4058_v34 = vpop.f32.mrb[15].mxu1 }
 0x151   : > { %4973 = vst [vmem:[#allocation32_spill] sm:$0xff] %v4058_v34  ;;  %1150 = vmax.xlane.f32.xlu1 %v3890_v16  ;;  %4984 = vst [vmem:[#allocation43_spill] sm:$0xff] %v4324_v14 }
 0x152   : > { %1148 = vmax.xlane.f32.xlu0 %v3884_v13 }
 0x155   : > { %1130 = vmax.xlane.f32.xlu1 %v3902_v21  ;;  %v4306_v21 = vld [vmem:[#allocation2 + $0x70] sm:$0xff] }
 0x156   : > { %1128 = vmax.xlane.f32.xlu0 %v3894_v17 }
 0x159   : > { %1162 = vmax.xlane.f32.xlu1 %v3906_v23  ;;  %v4299_v23 = vld [vmem:[#allocation2 + $0x78] sm:$0xff] }
 0x15a   : > { %1160 = vmax.xlane.f32.xlu0 %v3899_v19 }
 0x15d   : > { %1126 = vmax.xlane.f32.xlu1 %v3908_v24  ;;  %v4270_v24 = vld [vmem:[#allocation2 + $0x40] sm:$0xff] }
 0x15e   : > { %1124 = vmax.xlane.f32.xlu0 %v3897_v18 }
 0x161   : > { %1158 = vmax.xlane.f32.xlu1 %v3910_v25  ;;  %v4263_v25 = vld [vmem:[#allocation2 + $0x48] sm:$0xff] }
 0x162   : > { %1156 = vmax.xlane.f32.xlu0 %v3904_v22  ;;  %v4252_v22 = vld [vmem:[#allocation2 + $0xd0] sm:$0xff] }
 0x163   : > { %4977 = vst [vmem:[#allocation36_spill] sm:$0xff] %v4252_v22 }
 0x165   : > { %1138 = vmax.xlane.f32.xlu1 %v3922_v29  ;;  %v3338_v29 = vld [vmem:[%s4084_s28 + $0x38] sm:$0xff]  }
 0x166   : > { %1136 = vmax.xlane.f32.xlu0 %v3914_v26  ;;  %v4246_v26 = vld [vmem:[#allocation2 + $0xd8] sm:$0xff] }
 0x167   : > { %4976 = vst [vmem:[#allocation35_spill] sm:$0xff] %v4246_v26 }
 0x169   : > { %1170 = vmax.xlane.f32.xlu1 %v4054_v32  ;;  %v4235_v32 = vld [vmem:[#allocation2 + $0x50] sm:$0xff] }
 0x16a   : > { %1168 = vmax.xlane.f32.xlu0 %v3919_v28  ;;  %v3337_v28 = vld [vmem:[%s4084_s28 + $0x78] sm:$0xff]  }
 0x16d   : > { %1134 = vmax.xlane.f32.xlu1 %v4056_v33  ;;  %v3336_v33 = vld [vmem:[%s4084_s28 + $0x30] sm:$0xff]  }
 0x16e   : > { %1132 = vmax.xlane.f32.xlu0 %v3917_v27  ;;  %v4228_v27 = vld [vmem:[#allocation2 + $0x58] sm:$0xff] }
 0x171   : > { %1166 = vmax.xlane.f32.xlu1 %v4058_v34  ;;  %v4217_v34 = vld [vmem:[#allocation2 + $0xa0] sm:$0xff] }
 0x172   : > { %1164 = vmax.xlane.f32.xlu0 %v3924_v30  ;;  %v3335_v30 = vld [vmem:[%s4084_s28 + $0x70] sm:$0xff]  }
 0x1c2   : > { %v1113_v38 = vpop.xlane.xlu1 %1112 }
 0x1c3   : > { %v1145_v40 = vpop.xlane.xlu0 %1144  ;;  %v4092_v41 = vmax.f32 %v4078_v35, %v1113_v38  ;;  %v3329_v38 = vld [vmem:[%s4084_s28 + $0x58] sm:$0xff]  }
 0x1c4   : > { %v4097_v43 = vmax.f32 %v4086_v36, %v1145_v40  ;;  %3185 = vmatprep.subr.bf16.mxu1 %v3329_v38 }
 0x1c5   : > { %2361 = vst.msk [vmem:[#allocation2 + $0x10] sm:$0xff] %vm351_vm1, %v4092_v41  ;;  %1312 = vperm.xlu1 %3305, %v4092_v41   ;;  %3186 = vmatpush3.bf16.msra.mxu1 %v3329_v38 }
 0x1c6   : > { %2377 = vst.msk [vmem:[#allocation2 + $0x90] sm:$0xff] %vm351_vm1, %v4097_v43  ;;  %v1115_v48 = vpop.xlane.xlu1 %1114 }
 0x1c7   : > { %v1109_v49 = vpop.xlane.xlu0 %1108  ;;  %v4111_v50 = vmax.f32 %v4089_v39, %v1115_v48 }
 0x1c8   : > { %v4116_v52 = vmax.f32 %v4094_v42, %v1109_v49 }
 0x1c9   : > { %2362 = vst.msk [vmem:[#allocation2 + $0x18] sm:$0xff] %vm351_vm1, %v4111_v50  ;;  %1392 = vperm.xlu1 %3305, %v4097_v43  }
 0x1ca   : > { %2359 = vst.msk [vmem:[#allocation2] sm:$0xff] %vm351_vm1, %v4116_v52  ;;  %1302 = vperm.xlu0 %3306, %v4116_v52   ;;  %v1147_v54 = vpop.xlane.xlu1 %1146 }
 0x1cb   : > { %v1141_v57 = vpop.xlane.xlu0 %1140  ;;  %v4129_v58 = vmax.f32 %v4118_v53, %v1147_v54 }
 0x1cc   : > { %v4132_v59 = vmax.f32 %v4113_v51, %v1141_v57  ;;  %v3330_v57 = vld [vmem:[%s4084_s28 + $0x18] sm:$0xff]  }
 0x1cd   : > { %2378 = vst.msk [vmem:[#allocation2 + $0x98] sm:$0xff] %vm351_vm1, %v4129_v58  ;;  %3153 = vmatprep.subr.bf16.mxu0 %v3330_v57 }
 0x1ce   : > { %2375 = vst.msk [vmem:[#allocation2 + $0x80] sm:$0xff] %vm351_vm1, %v4132_v59  ;;  %1397 = vperm.xlu0 %3306, %v4129_v58   ;;  %1382 = vperm.xlu1 %3305, %v4132_v59   ;;  %v1143_v0 = vpop.xlane.xlu1 %1142 }
 0x1cf   : > { %v4149_v20 = vmax.f32 %v4134_v60, %v1143_v0  ;;  %v1111_v31 = vpop.xlane.xlu0 %1110  ;;  %v3331_v0 = vld [vmem:[%s4084_s28 + $0x60] sm:$0xff]   ;;  %3154 = vmatpush3.bf16.msra.mxu0 %v3330_v57  ;;  %v3334_v57 = vld [vmem:[%s4084_s28 + $0x28] sm:$0xff]   ;;  %s3505_s28 = scalar_lea.vmem %s3504_s27, 4096 }
 0x1d0   : > { %v4154_v40 = vmax.f32 %v4140_v62, %v1111_v31  ;;  %v4178_v31 = vld [vmem:[#allocation2 + $0xb0] sm:$0xff]  ;;  %3187 = vmatprep.subr.bf16.mxu1 %v3331_v0  ;;  %3155 = vmatprep.subr.bf16.mxu0 %v3332_v63  ;;  %p3507_p4 = scmp.lt.s32.totalorder %s3505_s28, %s3499_s21 }
 0x1d1   : > { %2376 = vst.msk [vmem:[#allocation2 + $0x88] sm:$0xff] %vm351_vm1, %v4149_v20  ;;  %3188 = vmatpush3.bf16.msra.mxu1 %v3331_v0 }
 0x1d2   : > { %2360 = vst.msk [vmem:[#allocation2 + $0x8] sm:$0xff] %vm351_vm1, %v4154_v40  ;;  %1387 = vperm.xlu0 %3306, %v4149_v20   ;;  %1317 = vperm.xlu1 %3305, %v4111_v50   ;;  %v1123_v48 = vpop.xlane.xlu1 %1122  ;;  %p3508_p5 = por %p3507_p4, %p3506_p2 }
 0x1d3   : > { %v1121_v49 = vpop.xlane.xlu0 %1120  ;;  %v4167_v54 = vmax.f32 %v4156_v45, %v1123_v48  ;;  %3189 = vmatprep.subr.bf16.mxu1 %v3333_v61  ;;  %3156 = vmatpush3.bf16.msra.mxu0 %v3332_v63 }
 0x1d4   : > { %v4170_v55 = vmax.f32 %v4160_v46, %v1121_v49  ;;  %3157 = vmatprep.subr.bf16.mxu0 %v3334_v57  ;;  %p3509_p6 = pnand %p3508_p5, %p3502_p1 }
 0x1d5   : > { %2366 = vst.msk [vmem:[#allocation2 + $0x38] sm:$0xff] %vm351_vm1, %v4167_v54  ;;  %3190 = vmatpush3.bf16.msra.mxu1 %v3333_v61 }
 0x1d6   : > { %2365 = vst.msk [vmem:[#allocation2 + $0x30] sm:$0xff] %vm351_vm1, %v4170_v55  ;;  %1307 = vperm.xlu1 %3305, %v4154_v40   ;;  %v1155_v37 = vpop.xlane.xlu1 %1154  ;;  %3191 = vmatprep.subr.bf16.mxu1 %v3335_v30 }
 0x1d7   : > { %v1153_v38 = vpop.xlane.xlu0 %1152  ;;  %v4184_v48 = vmax.f32 %v4172_v56, %v1155_v37  ;;  %v4198_v37 = vld [vmem:[#allocation2 + $0x20] sm:$0xff]  ;;  %v4211_v56 = vld [vmem:[#allocation2 + $0xa8] sm:$0xff]  ;;  %3158 = vmatpush3.bf16.msra.mxu0 %v3334_v57 }
 0x1d8   : > { %v4187_v49 = vmax.f32 %v4178_v31, %v1153_v38  ;;  %3159 = vmatprep.subr.bf16.mxu0 %v3336_v33 }
 0x1d9   : > { %4975 = vst [vmem:[#allocation34_spill] sm:$0xff] %v4184_v48  ;;  %2382 = vst.msk [vmem:[#allocation2 + $0xb8] sm:$0xff] %vm351_vm1, %v4184_v48  ;;  %1417 = vperm.xlu0 %3306, %v4184_v48   ;;  %3192 = vmatpush3.bf16.msra.mxu1 %v3335_v30 }
 0x1da   : > { %2381 = vst.msk [vmem:[#allocation2 + $0xb0] sm:$0xff] %vm351_vm1, %v4187_v49  ;;  %1332 = vperm.xlu1 %3305, %v4170_v55   ;;  %v1119_v0 = vpop.xlane.xlu1 %1118  ;;  %3193 = vmatprep.subr.bf16.mxu1 %v3337_v28 }
 0x1db   : > { %v1117_v38 = vpop.xlane.xlu0 %1116  ;;  %v4206_v44 = vmax.f32 %v4189_v47, %v1119_v0  ;;  %3160 = vmatpush3.bf16.msra.mxu0 %v3336_v33 }
 0x1dc   : > { %v4209_v48 = vmax.f32 %v4198_v37, %v1117_v38  ;;  %3161 = vmatprep.subr.bf16.mxu0 %v3338_v29 }
 0x1dd   : > { %2364 = vst.msk [vmem:[#allocation2 + $0x28] sm:$0xff] %vm351_vm1, %v4206_v44  ;;  %3194 = vmatpush3.bf16.msra.mxu1 %v3337_v28 }
 0x1de   : > { %2363 = vst.msk [vmem:[#allocation2 + $0x20] sm:$0xff] %vm351_vm1, %v4209_v48  ;;  %1412 = vperm.xlu1 %3305, %v4187_v49   ;;  %v1151_v63 = vpop.xlane.xlu1 %1150 }
 0x1df   : > { %v1149_v0 = vpop.xlane.xlu0 %1148  ;;  %v4223_v38 = vmax.f32 %v4211_v56, %v1151_v63  ;;  %3162 = vmatpush3.bf16.msra.mxu0 %v3338_v29 }
 0x1e0   : > { %v4226_v61 = vmax.f32 %v4217_v34, %v1149_v0 }
 0x1e1   : > { %2380 = vst.msk [vmem:[#allocation2 + $0xa8] sm:$0xff] %vm351_vm1, %v4223_v38  ;;  %1407 = vperm.xlu0 %3306, %v4223_v38  }
 0x1e2   : > { %2379 = vst.msk [vmem:[#allocation2 + $0xa0] sm:$0xff] %vm351_vm1, %v4226_v61  ;;  %1322 = vperm.xlu1 %3305, %v4209_v48   ;;  %v1131_v57 = vpop.xlane.xlu1 %1130 }
 0x1e3   : > { %v1129_v63 = vpop.xlane.xlu0 %1128  ;;  %v4241_v30 = vmax.f32 %v4228_v27, %v1131_v57 }
 0x1e4   : > { %v4244_v0 = vmax.f32 %v4235_v32, %v1129_v63 }
 0x1e5   : > { %2370 = vst.msk [vmem:[#allocation2 + $0x58] sm:$0xff] %vm351_vm1, %v4241_v30  ;;  %1357 = vperm.xlu0 %3306, %v4241_v30  }
 0x1e6   : > { %2369 = vst.msk [vmem:[#allocation2 + $0x50] sm:$0xff] %vm351_vm1, %v4244_v0  ;;  %1402 = vperm.xlu1 %3305, %v4226_v61   ;;  %v1163_v33 = vpop.xlane.xlu1 %1162 }
 0x1e7   : > { %v1161_v57 = vpop.xlane.xlu0 %1160  ;;  %v4258_v63 = vmax.f32 %v4246_v26, %v1163_v33  ;;  %v4283_v26 = vld [vmem:[#allocation2 + $0xc8] sm:$0xff]  ;;  %v4288_v33 = vld [vmem:[#allocation2 + $0xc0] sm:$0xff] }
 0x1e8   : > { %v4261_v28 = vmax.f32 %v4252_v22, %v1161_v57  ;;  %4980 = vst [vmem:[#allocation39_spill] sm:$0xff] %v4283_v26  ;;  %4981 = vst [vmem:[#allocation40_spill] sm:$0xff] %v4288_v33 }
 0x1e9   : > { %4978 = vst [vmem:[#allocation37_spill] sm:$0xff] %v4258_v63  ;;  %2386 = vst.msk [vmem:[#allocation2 + $0xd8] sm:$0xff] %vm351_vm1, %v4258_v63  ;;  %1437 = vperm.xlu0 %3306, %v4258_v63  }
 0x1ea   : > { %4979 = vst [vmem:[#allocation38_spill] sm:$0xff] %v4261_v28  ;;  %2385 = vst.msk [vmem:[#allocation2 + $0xd0] sm:$0xff] %vm351_vm1, %v4261_v28  ;;  %1337 = vperm.xlu1 %3305, %v4167_v54   ;;  %v1127_v29 = vpop.xlane.xlu1 %1126 }
 0x1eb   : > { %v1125_v57 = vpop.xlane.xlu0 %1124  ;;  %v4278_v19 = vmax.f32 %v4263_v25, %v1127_v29 }
 0x1ec   : > { %v4281_v18 = vmax.f32 %v4270_v24, %v1125_v57 }
 0x1ed   : > { %2368 = vst.msk [vmem:[#allocation2 + $0x48] sm:$0xff] %vm351_vm1, %v4278_v19  ;;  %1347 = vperm.xlu0 %3306, %v4278_v19  }
 0x1ee   : > { %2367 = vst.msk [vmem:[#allocation2 + $0x40] sm:$0xff] %vm351_vm1, %v4281_v18  ;;  %1327 = vperm.xlu1 %3305, %v4206_v44   ;;  %v1159_v22 = vpop.xlane.xlu1 %1158 }
 0x1ef   : > { %v1157_v29 = vpop.xlane.xlu0 %1156  ;;  %v4294_v63 = vmax.f32 %v4283_v26, %v1159_v22  ;;  %v4319_v26 = vld [vmem:[#allocation2 + $0xf8] sm:$0xff] }
 0x1f0   : > { %v4297_v57 = vmax.f32 %v4288_v33, %v1157_v29  ;;  %4983 = vst [vmem:[#allocation42_spill] sm:$0xff] %v4319_v26 }
 0x1f1   : > { %4982 = vst [vmem:[#allocation41_spill] sm:$0xff] %v4294_v63  ;;  %2384 = vst.msk [vmem:[#allocation2 + $0xc8] sm:$0xff] %vm351_vm1, %v4294_v63  ;;  %1427 = vperm.xlu0 %3306, %v4294_v63   ;;  %v1204_v63 = vsub.f32 %v4094_v42, %v4116_v52  ;;  %v4343_v42 = vld [vmem:[#allocation2 + $0x60] sm:$0xff] }
 0x1f2   : > { %2383 = vst.msk [vmem:[#allocation2 + $0xc0] sm:$0xff] %vm351_vm1, %v4297_v57  ;;  %1352 = vperm.xlu1 %3305, %v4244_v0   ;;  %v1139_v22 = vpop.xlane.xlu1 %1138 }
 0x1f3   : > { %v1137_v29 = vpop.xlane.xlu0 %1136  ;;  %v4314_v10 = vmax.f32 %v4299_v23, %v1139_v22  ;;  %v1236_v52 = vmul.f32 1.442695, %v1204_v63  ;;  %v4358_v63 = vld [vmem:[#allocation2 + $0xe8] sm:$0xff] }
 0x1f4   : > { %v4317_v17 = vmax.f32 %v4306_v21, %v1137_v29 }
 0x1f5   : > { %2374 = vst.msk [vmem:[#allocation2 + $0x78] sm:$0xff] %vm351_vm1, %v4314_v10  ;;  %1377 = vperm.xlu0 %3306, %v4314_v10   ;;  %3339 = vpow2.f32 %v1236_v52 }
 0x1f6   : > { %2373 = vst.msk [vmem:[#allocation2 + $0x70] sm:$0xff] %vm351_vm1, %v4317_v17  ;;  %1432 = vperm.xlu1 %3305, %v4261_v28   ;;  %v1171_v22 = vpop.xlane.xlu1 %1170  ;;  %v1207_v28 = vsub.f32 %v4089_v39, %v4111_v50  ;;  %v4363_v39 = vld [vmem:[#allocation2 + $0xe0] sm:$0xff] }
 0x1f7   : > { %v1169_v29 = vpop.xlane.xlu0 %1168  ;;  %v4332_v33 = vmax.f32 %v4319_v26, %v1171_v22  ;;  %v1209_v22 = vsub.f32 %v4189_v47, %v4206_v44  ;;  %v1211_v44 = vsub.f32 %v4156_v45, %v4167_v54  ;;  %v4985_v45 = vsub.f32 %v4078_v35, %v4092_v41 }
 0x1f8   : > { %v4335_v12 = vmax.f32 %v4324_v14, %v1169_v29  ;;  %v1242_v50 = vmul.f32 1.442695, %v1207_v28  ;;  %v4986_v35 = vsub.f32 %v4118_v53, %v4129_v58  ;;  %v1215_v53 = vsub.f32 %v4228_v27, %v4241_v30 }
 0x1f9   : > { %2390 = vst.msk [vmem:[#allocation2 + $0xf8] sm:$0xff] %vm351_vm1, %v4332_v33  ;;  %v1246_v47 = vmul.f32 1.442695, %v1209_v22  ;;  %v1250_v52 = vmul.f32 1.442695, %v1211_v44  ;;  %v1208_v22 = vsub.f32 %v4198_v37, %v4209_v48  ;;  %v1225_v48 = vsub.f32 %v4211_v56, %v4223_v38 }
 0x1fa   : > { %2389 = vst.msk [vmem:[#allocation2 + $0xf0] sm:$0xff] %vm351_vm1, %v4335_v12  ;;  %1342 = vperm.xlu1 %3305, %v4281_v18   ;;  %v1135_v29 = vpop.xlane.xlu1 %1134  ;;  %3341 = vpow2.f32 %v1242_v50  ;;  %v1240_v54 = vmul.f32 1.442695, %v4985_v45  ;;  %v1274_v41 = vmul.f32 1.442695, %v4986_v35  ;;  %v4987_v58 = vsub.f32 %v4113_v51, %v4132_v59 }
 0x1fb   : > { %v1133_v16 = vpop.xlane.xlu0 %1132  ;;  %v4353_v13 = vmax.f32 %v4337_v9, %v1135_v29  ;;  %v1205_v29 = vsub.f32 %v4140_v62, %v4154_v40  ;;  %v1221_v40 = vsub.f32 %v4134_v60, %v4149_v20  ;;  %3343 = vpow2.f32 %v1246_v47 }
 0x1fc   : > { %v4356_v26 = vmax.f32 %v4343_v42, %v1133_v16  ;;  %v1210_v60 = vsub.f32 %v4160_v46, %v4170_v55  ;;  %v1244_v20 = vmul.f32 1.442695, %v1208_v22  ;;  %v1278_v55 = vmul.f32 1.442695, %v1225_v48 }
 0x1fd   : > { %2372 = vst.msk [vmem:[#allocation2 + $0x68] sm:$0xff] %vm351_vm1, %v4353_v13  ;;  %1367 = vperm.xlu0 %3306, %v4353_v13   ;;  %v1268_v56 = vmul.f32 1.442695, %v4987_v58  ;;  %v4988_v27 = vsub.f32 %v4086_v36, %v4097_v43  ;;  %v1224_v51 = vsub.f32 %v4217_v34, %v4226_v61  ;;  %v1217_v61 = vsub.f32 %v4337_v9, %v4353_v13 }
 0x1fe   : > { %2371 = vst.msk [vmem:[#allocation2 + $0x60] sm:$0xff] %vm351_vm1, %v4356_v26  ;;  %1422 = vperm.xlu1 %3305, %v4297_v57   ;;  %v1167_v16 = vpop.xlane.xlu1 %1166  ;;  %v1248_v37 = vmul.f32 1.442695, %v1210_v60  ;;  %v1212_v13 = vsub.f32 %v4270_v24, %v4281_v18  ;;  %v1216_v24 = vsub.f32 %v4343_v42, %v4356_v26 }
 0x1ff   : > { %v1165_v14 = vpop.xlane.xlu0 %1164  ;;  %v4373_v11 = vmax.f32 %v4358_v63, %v1167_v16  ;;  %v4399_v50 = vpop.eup %3339  ;;  %v1270_v16 = vmul.f32 1.442695, %v1221_v40  ;;  %v1213_v40 = vsub.f32 %v4263_v25, %v4278_v19  ;;  %v1272_v30 = vmul.f32 1.442695, %v4988_v27 }
 0x200   : > { %v4376_v15 = vmax.f32 %v4363_v39, %v1165_v14  ;;  %v1238_v14 = vmul.f32 1.442695, %v1205_v29  ;;  %v1219_v19 = vsub.f32 %v4299_v23, %v4314_v10  ;;  %v1276_v25 = vmul.f32 1.442695, %v1224_v51 }
 0x201   : > { %v1233_v28 = vsub.f32 %v4358_v63, %v4373_v11  ;;  %2388 = vst.msk [vmem:[#allocation2 + $0xe8] sm:$0xff] %vm351_vm1, %v4373_v11  ;;  %1447 = vperm.xlu0 %3306, %v4373_v11   ;;  %v1254_v45 = vmul.f32 1.442695, %v1213_v40  ;;  %v4989_v10 = vsub.f32 %v4178_v31, %v4187_v49  ;;  %v1262_v60 = vmul.f32 1.442695, %v1217_v61 }
 0x202   : > { %v1232_v62 = vsub.f32 %v4363_v39, %v4376_v15  ;;  %2387 = vst.msk [vmem:[#allocation2 + $0xe0] sm:$0xff] %vm351_vm1, %v4376_v15  ;;  %1372 = vperm.xlu1 %3305, %v4317_v17   ;;  %3345 = vpow2.f32 %v1238_v14  ;;  %v1258_v14 = vmul.f32 1.442695, %v1215_v53  ;;  %v1266_v34 = vmul.f32 1.442695, %v1219_v19 }
 0x203   : > { %3347 = vpow2.f32 %v1250_v52  ;;  %v1280_v23 = vmul.f32 1.442695, %v4989_v10 }
 0x204   : > { %3349 = vpow2.f32 %v1240_v54  ;;  %v4405_v29 = vpop.eup %3341  ;;  %v1214_v54 = vsub.f32 %v4235_v32, %v4244_v0  ;;  %v1252_v32 = vmul.f32 1.442695, %v1212_v13  ;;  %v1218_v0 = vsub.f32 %v4306_v21, %v4317_v17 }
 0x205   : > { %1457 = vperm.xlu0 %3306, %v4332_v33   ;;  %3351 = vpow2.f32 %v1270_v16  ;;  %v4414_v44 = vpop.eup %3343  ;;  %v1260_v17 = vmul.f32 1.442695, %v1216_v24 }
 0x206   : > { %1452 = vperm.xlu1 %3305, %v4335_v12   ;;  %3353 = vpow2.f32 %v1244_v20  ;;  %v1256_v9 = vmul.f32 1.442695, %v1214_v54  ;;  %v1264_v18 = vmul.f32 1.442695, %v1218_v0 }
 0x207   : > { %3355 = vpow2.f32 %v1274_v41 }
 0x208   : > { %3357 = vpow2.f32 %v1248_v37 }
 0x209   : > { %1815 = vperm.xlu0 %3306, %v4399_v50   ;;  %3359 = vpow2.f32 %v1278_v55 }
 0x20a   : > { %1362 = vperm.xlu1 %3305, %v4356_v26   ;;  %3361 = vpow2.f32 %v1268_v56 }
 0x20b   : > { %3363 = vpow2.f32 %v1258_v14 }
 0x20c   : > { %v4416_v46 = vpop.eup %3345  ;;  %3365 = vpow2.f32 %v1272_v30 }
 0x20d   : > { %1830 = vperm.xlu0 %3306, %v4405_v29   ;;  %v4425_v38 = vpop.eup %3347  ;;  %3367 = vpow2.f32 %v1254_v45 }
 0x20e   : > { %1442 = vperm.xlu1 %3305, %v4376_v15   ;;  %v4427_v47 = vpop.eup %3349  ;;  %3369 = vpow2.f32 %v1276_v25 }
 0x20f   : > { %v4438_v59 = vpop.eup %3351  ;;  %3371 = vpow2.f32 %v1266_v34 }
 0x210   : > { %v4440_v52 = vpop.eup %3353  ;;  %3373 = vpow2.f32 %v1280_v23 }
 0x211   : > { %1840 = vperm.xlu0 %3306, %v4414_v44   ;;  %v4446_v36 = vpop.eup %3355  ;;  %3375 = vpow2.f32 %v1262_v60 }
 0x212   : > { %1820 = vperm.xlu1 %3305, %v4416_v46   ;;  %v4448_v43 = vpop.eup %3357  ;;  %3377 = vpow2.f32 %v1256_v9 }
 0x213   : > { %v4459_v22 = vpop.eup %3359  ;;  %3379 = vpow2.f32 %v1252_v32 }
 0x214   : > { %v4461_v16 = vpop.eup %3361  ;;  %3381 = vpow2.f32 %v1264_v18 }
 0x215   : > { %1850 = vperm.xlu0 %3306, %v4425_v38   ;;  %v4467_v31 = vpop.eup %3363  ;;  %3383 = vpow2.f32 %v1260_v17  ;;  %v4991_v17 = vld [vmem:[#allocation11_spill] sm:$0xff] }
 0x216   : > { %1825 = vperm.xlu1 %3305, %v4427_v47   ;;  %v4469_v49 = vpop.eup %3365 }
 0x217   : > { %v4475_v20 = vpop.eup %3367 }
 0x218   : > { %v4477_v35 = vpop.eup %3369 }
 0x219   : > { %1900 = vperm.xlu0 %3306, %v4438_v59   ;;  %v4483_v41 = vpop.eup %3371 }
 0x21a   : > { %1835 = vperm.xlu1 %3305, %v4440_v52   ;;  %v4485_v48 = vpop.eup %3373 }
 0x21b   : > { %v4489_v21 = vpop.eup %3375 }
 0x21c   : > { %v4491_v37 = vpop.eup %3377 }
 0x21d   : > { %1910 = vperm.xlu0 %3306, %v4446_v36   ;;  %v4495_v26 = vpop.eup %3379 }
 0x21e   : > { %1845 = vperm.xlu1 %3305, %v4448_v43   ;;  %v4498_v42 = vpop.eup %3381 }
 0x21f   : > { %v4501_v55 = vpop.eup %3383 }
 0x221   : > { %1920 = vperm.xlu0 %3306, %v4459_v22  }
 0x222   : > { %1895 = vperm.xlu1 %3305, %v4461_v16  }
 0x225   : > { %1870 = vperm.xlu0 %3306, %v4467_v31  }
 0x226   : > { %1905 = vperm.xlu1 %3305, %v4469_v49  }
 0x229   : > { %1860 = vperm.xlu0 %3306, %v4475_v20  }
 0x22a   : > { %1915 = vperm.xlu1 %3305, %v4477_v35  }
 0x22d   : > { %1890 = vperm.xlu0 %3306, %v4483_v41  }
 0x22e   : > { %1925 = vperm.xlu1 %3305, %v4485_v48  }
 0x231   : > { %1880 = vperm.xlu0 %3306, %v4489_v21  }
 0x232   : > { %1865 = vperm.xlu1 %3305, %v4491_v37  }
 0x236   : > { %1855 = vperm.xlu1 %3305, %v4495_v26  }
 0x23a   : > { %1885 = vperm.xlu1 %3305, %v4498_v42  }
 0x23e   : > { %1875 = vperm.xlu1 %3305, %v4501_v55  }
 0x244   : > { %v1313_v53 = vpop.permute.xlu1 %1312 }
 0x245   : > { %v1462_v25 = vsub.f32 %v3854_v1, %v1313_v53 }
 0x248   : > { %v1393_v58 = vpop.permute.xlu1 %1392 }
 0x249   : > { %v1303_v56 = vpop.permute.xlu0 %1302  ;;  %v1478_v27 = vsub.f32 %v3856_v2, %v1393_v58 }
 0x24a   : > { %v1460_v13 = vsub.f32 %v3859_v3, %v1303_v56 }
 0x24d   : > { %v1398_v14 = vpop.permute.xlu0 %1397  ;;  %v1383_v40 = vpop.permute.xlu1 %1382 }
 0x24e   : > { %v1479_v30 = vsub.f32 %v3866_v6, %v1398_v14  ;;  %v1476_v34 = vsub.f32 %v3862_v4, %v1383_v40 }
 0x250   : > { %v1501_v51 = vpack.c.bf16 %v1479_v30, %v1478_v27 }
 0x251   : > { %v1388_v45 = vpop.permute.xlu0 %1387  ;;  %v1318_v19 = vpop.permute.xlu1 %1317 }
 0x252   : > { %v1477_v61 = vsub.f32 %v3870_v8, %v1388_v45  ;;  %v1463_v10 = vsub.f32 %v3864_v5, %v1318_v19  ;;  %v1536_v23 = vmul.bf16 1069105081, %v1501_v51  ;;  %v4990_v5 = vld [vmem:[#allocation15_spill] sm:$0xff]  ;;  %v4992_v19 = vld [vmem:[#allocation16_spill] sm:$0xff] }
 0x254   : > { %v1500_v54 = vpack.c.bf16 %v1477_v61, %v1476_v34  ;;  %v1493_v60 = vpack.c.bf16 %v1463_v10, %v1462_v25  ;;  %3385 = vpow.bf16 %v1536_v23  ;;  %v4993_v34 = vld [vmem:[#allocation13_spill] sm:$0xff] }
 0x255   : > { %v1308_v9 = vpop.permute.xlu1 %1307 }
 0x256   : > { %v1533_v2 = vmul.bf16 1069105081, %v1500_v54  ;;  %v1512_v32 = vmul.bf16 1069105081, %v1493_v60  ;;  %v1461_v6 = vsub.f32 %v3868_v7, %v1308_v9 }
 0x258   : > { %3387 = vpow.bf16 %v1533_v2  ;;  %v1492_v0 = vpack.c.bf16 %v1461_v6, %v1460_v13  ;;  %v1418_v18 = vpop.permute.xlu0 %1417 }
 0x259   : > { %3389 = vpow.bf16 %v1512_v32  ;;  %v1333_v1 = vpop.permute.xlu1 %1332  ;;  %v1483_v24 = vsub.f32 %v4990_v5, %v1418_v18  ;;  %v4994_v32 = vld [vmem:[#allocation9_spill] sm:$0xff] }
 0x25a   : > { %v1509_v4 = vmul.bf16 1069105081, %v1492_v0  ;;  %v1466_v6 = vsub.f32 %v4994_v32, %v1333_v1  ;;  %v5001_v32 = vld [vmem:[#allocation19_spill] sm:$0xff] }
 0x25c   : > { %3391 = vpow.bf16 %v1509_v4  ;;  %v4995_v4 = vld [vmem:[#allocation12_spill] sm:$0xff] }
 0x25d   : > { %v1413_v8 = vpop.permute.xlu1 %1412 }
 0x25e   : > { %v1482_v53 = vsub.f32 %v4991_v17, %v1413_v8 }
 0x25f   : > { %v3386_v56 = vpop.eup %3385 }
 0x260   : > { %v1503_v58 = vpack.c.bf16 %v1483_v24, %v1482_v53  ;;  %v1408_v14 = vpop.permute.xlu0 %1407  ;;  %v1639_v13 = vunpack.c.h.bf16 %v3386_v56  ;;  %v1638_v2 = vunpack.c.l.bf16 %v3386_v56 }
 0x261   : > { %v1323_v3 = vpop.permute.xlu1 %1322  ;;  %v1481_v25 = vsub.f32 %v4992_v19, %v1408_v14  ;;  %v4996_v14 = vld [vmem:[#allocation10_spill] sm:$0xff] }
 0x262   : > { %v1542_v60 = vmul.bf16 1069105081, %v1503_v58  ;;  %v1464_v58 = vsub.f32 %v4996_v14, %v1323_v3 }
 0x263   : > { %v3388_v40 = vpop.eup %3387 }
 0x264   : > { %v3390_v27 = vpop.eup %3389  ;;  %3195 = vmatprep.mubr.bf16.mxu1 %v3388_v40  ;;  %v1358_v7 = vpop.permute.xlu0 %1357  ;;  %v1637_v19 = vunpack.c.h.bf16 %v3388_v40 }
 0x265   : > { %3196 = vmatmul.mubr.bf16.vlgmr.msra.gmra.mrb[16].mxu1 %v3386_v56  ;;  %v1403_v30 = vpop.permute.xlu1 %1402  ;;  %v1623_v51 = vunpack.c.h.bf16 %v3390_v27  ;;  %v1622_v45 = vunpack.c.l.bf16 %v3390_v27 }
 0x266   : > { %v1480_v61 = vsub.f32 %v4993_v34, %v1403_v30  ;;  %v4997_v30 = vld [vmem:[#allocation14_spill] sm:$0xff] }
 0x267   : > { %v3392_v10 = vpop.eup %3391  ;;  %1658 = vadd.xlane.f32.xlu1 %v1623_v51  ;;  %1656 = vadd.xlane.f32.xlu0 %v1622_v45  ;;  %v1636_v45 = vunpack.c.l.bf16 %v3388_v40 }
 0x268   : > { %v1502_v23 = vpack.c.bf16 %v1481_v25, %v1480_v61  ;;  %3163 = vmatprep.mubr.bf16.mxu0 %v3392_v10  ;;  %v1438_v54 = vpop.permute.xlu0 %1437  ;;  %v1621_v17 = vunpack.c.h.bf16 %v3392_v10  ;;  %v1620_v53 = vunpack.c.l.bf16 %v3392_v10  ;;  %v4998_v25 = vld [vmem:[#allocation20_spill] sm:$0xff] }
 0x269   : > { %3164 = vmatmul.mubr.bf16.vlgmr.msra.gmra.mrb[16].mxu0 %v3390_v27  ;;  %v1338_v9 = vpop.permute.xlu1 %1337  ;;  %v1471_v34 = vsub.f32 %v4998_v25, %v1358_v7  ;;  %v5002_v7 = vld [vmem:[#allocation23_spill] sm:$0xff] }
 0x26a   : > { %v1539_v0 = vmul.bf16 1069105081, %v1502_v23  ;;  %v1467_v18 = vsub.f32 %v4995_v4, %v1338_v9 }
 0x26b   : > { %1690 = vadd.xlane.f32.xlu1 %v1639_v13  ;;  %1688 = vadd.xlane.f32.xlu0 %v1638_v2  ;;  %v5000_v13 = vld [vmem:[#allocation22_spill] sm:$0xff] }
 0x26c   : > { %3393 = vpow.bf16 %v1539_v0  ;;  %v1495_v8 = vpack.c.bf16 %v1467_v18, %v1466_v6  ;;  %v1348_v5 = vpop.permute.xlu0 %1347  ;;  %v1487_v2 = vsub.f32 %v5000_v13, %v1438_v54  ;;  %v5004_v54 = vld [vmem:[#allocation24_spill] sm:$0xff] }
 0x26d   : > { %3395 = vpow.bf16 %v1542_v60  ;;  %v1328_v24 = vpop.permute.xlu1 %1327  ;;  %v4999_v60 = vld [vmem:[#allocation17_spill] sm:$0xff] }
 0x26e   : > { %v1518_v27 = vmul.bf16 1069105081, %v1495_v8  ;;  %v1465_v51 = vsub.f32 %v4997_v30, %v1328_v24  ;;  %v1469_v24 = vsub.f32 %v5002_v7, %v1348_v5 }
 0x26f   : > { %1654 = vadd.xlane.f32.xlu0 %v1621_v17  ;;  %1652 = vadd.xlane.f32.xlu1 %v1620_v53  ;;  %v5003_v53 = vld [vmem:[#allocation18_spill] sm:$0xff] }
 0x270   : > { %3397 = vpow.bf16 %v1518_v27  ;;  %v1494_v1 = vpack.c.bf16 %v1465_v51, %v1464_v58  ;;  %v1428_v23 = vpop.permute.xlu0 %1427 }
 0x271   : > { %v1353_v56 = vpop.permute.xlu1 %1352 }
 0x272   : > { %v1515_v61 = vmul.bf16 1069105081, %v1494_v1  ;;  %v1470_v9 = vsub.f32 %v4999_v60, %v1353_v56  ;;  %v1485_v56 = vsub.f32 %v5004_v54, %v1428_v23 }
 0x273   : > { %1684 = vadd.xlane.f32.xlu0 %v1636_v45  ;;  %1686 = vadd.xlane.f32.xlu1 %v1637_v19 }
 0x274   : > { %3399 = vpow.bf16 %v1515_v61  ;;  %v1497_v3 = vpack.c.bf16 %v1471_v34, %v1470_v9  ;;  %v1378_v18 = vpop.permute.xlu0 %1377  ;;  %v5005_v34 = vld [vmem:[#allocation21_spill] sm:$0xff] }
 0x275   : > { %v1433_v10 = vpop.permute.xlu1 %1432 }
 0x276   : > { %v1486_v6 = vsub.f32 %v5001_v32, %v1433_v10  ;;  %v1524_v17 = vmul.bf16 1069105081, %v1497_v3 }
 0x277   : > { %v3394_v0 = vpop.eup %3393 }
 0x278   : > { %v3396_v4 = vpop.eup %3395  ;;  %v1505_v8 = vpack.c.bf16 %v1487_v2, %v1486_v6  ;;  %3199 = vmatprep.mubr.bf16.mxu1 %v3394_v0  ;;  %3401 = vpow.bf16 %v1524_v17  ;;  %v5006_v2 = vld [vmem:[#allocation28_spill] sm:$0xff]  ;;  %v5007_v6 = vld [vmem:[#allocation25_spill] sm:$0xff] }
 0x279   : > { %3200 = vmatmul.mubr.bf16.gmra.mrb[20].mxu1 %v3396_v4  ;;  %v1343_v40 = vpop.permute.xlu1 %1342  ;;  %v1643_v3 = vunpack.c.h.bf16 %v3396_v4  ;;  %v1642_v10 = vunpack.c.l.bf16 %v3396_v4  ;;  %v1475_v32 = vsub.f32 %v5006_v2, %v1378_v18  ;;  %v1641_v18 = vunpack.c.h.bf16 %v3394_v0  ;;  %v5012_v2 = vld [vmem:[#allocation32_spill] sm:$0xff] }
 0x27a   : > { %v1468_v14 = vsub.f32 %v5003_v53, %v1343_v40  ;;  %v1548_v19 = vmul.bf16 1069105081, %v1505_v8  ;;  %v5008_v53 = vld [vmem:[#allocation30_spill] sm:$0xff] }
 0x27b   : > { %v3398_v58 = vpop.eup %3397 }
 0x27c   : > { %v1496_v27 = vpack.c.bf16 %v1469_v24, %v1468_v14  ;;  %v1368_v30 = vpop.permute.xlu0 %1367  ;;  %v1627_v51 = vunpack.c.h.bf16 %v3398_v58  ;;  %v1626_v1 = vunpack.c.l.bf16 %v3398_v58 }
 0x27d   : > { %v1423_v45 = vpop.permute.xlu1 %1422 }
 0x27e   : > { %v1521_v25 = vmul.bf16 1069105081, %v1496_v27  ;;  %v1484_v61 = vsub.f32 %v5005_v34, %v1423_v45  ;;  %1666 = vadd.xlane.f32.xlu1 %v1627_v51  ;;  %1664 = vadd.xlane.f32.xlu0 %v1626_v1  ;;  %v5009_v51 = vld [vmem:[#allocation27_spill] sm:$0xff]  ;;  %v1640_v1 = vunpack.c.l.bf16 %v3394_v0  ;;  %v5011_v34 = vld [vmem:[#allocation26_spill] sm:$0xff] }
 0x27f   : > { %v3400_v60 = vpop.eup %3399  ;;  %v5010_v45 = vld [vmem:[#allocation31_spill] sm:$0xff] }
 0x280   : > { %3403 = vpow.bf16 %v1521_v25  ;;  %v1504_v5 = vpack.c.bf16 %v1485_v56, %v1484_v61  ;;  %3167 = vmatprep.mubr.bf16.mxu0 %v3400_v60  ;;  %v1448_v9 = vpop.permute.xlu0 %1447  ;;  %v1625_v24 = vunpack.c.h.bf16 %v3400_v60  ;;  %v1624_v17 = vunpack.c.l.bf16 %v3400_v60 }
 0x281   : > { %3168 = vmatmul.mubr.bf16.gmra.mrb[20].mxu0 %v3398_v58  ;;  %v1373_v13 = vpop.permute.xlu1 %1372  ;;  %3405 = vpow.bf16 %v1548_v19  ;;  %v1473_v19 = vsub.f32 %v5010_v45, %v1368_v30 }
 0x282   : > { %v1545_v23 = vmul.bf16 1069105081, %v1504_v5  ;;  %v1474_v8 = vsub.f32 %v5007_v6, %v1373_v13  ;;  %1698 = vadd.xlane.f32.xlu1 %v1643_v3  ;;  %1696 = vadd.xlane.f32.xlu0 %v1642_v10 }
 0x283   : > { %v3402_v54 = vpop.eup %3401 }
 0x284   : > { %3407 = vpow.bf16 %v1545_v23  ;;  %v1499_v40 = vpack.c.bf16 %v1475_v32, %v1474_v8  ;;  %v1458_v7 = vpop.permute.xlu0 %1457  ;;  %v1631_v3 = vunpack.c.h.bf16 %v3402_v54  ;;  %v1630_v10 = vunpack.c.l.bf16 %v3402_v54  ;;  %v5013_v8 = vld [vmem:[#allocation29_spill] sm:$0xff] }
 0x285   : > { %v1491_v14 = vsub.f32 %v5008_v53, %v1458_v7  ;;  %v1453_v27 = vpop.permute.xlu1 %1452  ;;  %v1489_v32 = vsub.f32 %v5012_v2, %v1448_v9  ;;  %v5017_v2 = vld [vmem:[#allocation34_spill] sm:$0xff] }
 0x286   : > { %v1490_v4 = vsub.f32 %v5009_v51, %v1453_v27  ;;  %1662 = vadd.xlane.f32.xlu1 %v1625_v24  ;;  %1660 = vadd.xlane.f32.xlu0 %v1624_v17  ;;  %v1530_v25 = vmul.bf16 1069105081, %v1499_v40 }
 0x288   : > { %v1507_v58 = vpack.c.bf16 %v1491_v14, %v1490_v4  ;;  %3409 = vpow.bf16 %v1530_v25 }
 0x289   : > { %v1363_v56 = vpop.permute.xlu1 %1362 }
 0x28a   : > { %v1472_v61 = vsub.f32 %v5011_v34, %v1363_v56  ;;  %1694 = vadd.xlane.f32.xlu1 %v1641_v18  ;;  %1692 = vadd.xlane.f32.xlu0 %v1640_v1  ;;  %v1554_v0 = vmul.bf16 1069105081, %v1507_v58 }
 0x28b   : > { %v3404_v60 = vpop.eup %3403 }
 0x28c   : > { %v1498_v5 = vpack.c.bf16 %v1473_v19, %v1472_v61  ;;  %3171 = vmatprep.mubr.bf16.mxu0 %v3404_v60  ;;  %v3406_v13 = vpop.eup %3405  ;;  %v1629_v9 = vunpack.c.h.bf16 %v3404_v60  ;;  %v1628_v14 = vunpack.c.l.bf16 %v3404_v60  ;;  %v5014_v61 = vld [vmem:[#allocation40_spill] sm:$0xff] }
 0x28d   : > { %3172 = vmatmul.mubr.bf16.gmra.mrb[24].mxu0 %v3402_v54  ;;  %v1443_v23 = vpop.permute.xlu1 %1442  ;;  %v1647_v24 = vunpack.c.h.bf16 %v3406_v13  ;;  %v1646_v17 = vunpack.c.l.bf16 %v3406_v13  ;;  %v5015_v60 = vsub.f32 %v5014_v61, %v4297_v57 }
 0x28e   : > { %v1527_v6 = vmul.bf16 1069105081, %v1498_v5  ;;  %v1488_v30 = vsub.f32 %v5013_v8, %v1443_v23  ;;  %1674 = vadd.xlane.f32.xlu1 %v1631_v3  ;;  %1672 = vadd.xlane.f32.xlu0 %v1630_v10  ;;  %v5019_v8 = vld [vmem:[#allocation39_spill] sm:$0xff] }
 0x28f   : > { %v3408_v40 = vpop.eup %3407  ;;  %v1284_v5 = vmul.f32 1.442695, %v5015_v60 }
 0x290   : > { %3411 = vpow.bf16 %v1527_v6  ;;  %v1506_v7 = vpack.c.bf16 %v1489_v32, %v1488_v30  ;;  %3203 = vmatprep.mubr.bf16.mxu1 %v3408_v40  ;;  %v1645_v27 = vunpack.c.h.bf16 %v3408_v40  ;;  %v1644_v51 = vunpack.c.l.bf16 %v3408_v40  ;;  %v5020_v30 = vld [vmem:[#allocation41_spill] sm:$0xff] }
 0x291   : > { %3204 = vmatmul.mubr.bf16.gmra.mrb[24].mxu1 %v3406_v13  ;;  %3413 = vpow.bf16 %v1554_v0  ;;  %v4539_v10 = vpop.permute.xlu1 %1820  ;;  %v5016_v13 = vld [vmem:[#allocation33_spill] sm:$0xff]  ;;  %v4544_v0 = vpop.permute.xlu0 %1815  ;;  %v5021_v40 = vsub.f32 %v5019_v8, %v5020_v30 }
 0x292   : > { %v1551_v53 = vmul.bf16 1069105081, %v1506_v7  ;;  %1706 = vadd.xlane.f32.xlu1 %v1647_v24  ;;  %1704 = vadd.xlane.f32.xlu0 %v1646_v17  ;;  %v5018_v32 = vsub.f32 %v5016_v13, %v5017_v2  ;;  %v5022_v24 = vld [vmem:[#allocation35_spill] sm:$0xff]  ;;  %v5023_v17 = vld [vmem:[#allocation37_spill] sm:$0xff] }
 0x293   : > { %v3410_v4 = vpop.eup %3409  ;;  %v1286_v7 = vmul.f32 1.442695, %v5021_v40 }
 0x294   : > { %3415 = vpow.bf16 %v1551_v53  ;;  %v1635_v18 = vunpack.c.h.bf16 %v3410_v4  ;;  %v1634_v1 = vunpack.c.l.bf16 %v3410_v4  ;;  %v1282_v23 = vmul.f32 1.442695, %v5018_v32  ;;  %v5028_v32 = vld [vmem:[#allocation36_spill] sm:$0xff] }
 0x295   : > { %3417 = vpow2.f32 %v1284_v5  ;;  %v4546_v6 = vpop.permute.xlu1 %1825  ;;  %v5024_v53 = vsub.f32 %v5022_v24, %v5023_v17  ;;  %v1292_v24 = vmul.f32 1.442695, %v1232_v62 }
 0x296   : > { %1670 = vadd.xlane.f32.xlu1 %v1629_v9  ;;  %1668 = vadd.xlane.f32.xlu0 %v1628_v14  ;;  %3419 = vpow2.f32 %v1282_v23  ;;  %v4557_v14 = vpop.permute.xlu0 %1830  ;;  %v5029_v23 = vld [vmem:[#allocation38_spill] sm:$0xff] }
 0x297   : > { %v1290_v9 = vmul.f32 1.442695, %v5024_v53  ;;  %3421 = vpow2.f32 %v1286_v7  ;;  %v5030_v8 = vsub.f32 %v5028_v32, %v5029_v23 }
 0x299   : > { %3423 = vpow2.f32 %v1290_v9  ;;  %v1288_v30 = vmul.f32 1.442695, %v5030_v8  ;;  %v5031_v9 = vld [vmem:[#allocation43_spill] sm:$0xff] }
 0x29a   : > { %1702 = vadd.xlane.f32.xlu1 %v1645_v27  ;;  %1700 = vadd.xlane.f32.xlu0 %v1644_v51  ;;  %v4559_v27 = vpop.permute.xlu1 %1835  ;;  %v1294_v51 = vmul.f32 1.442695, %v1233_v28 }
 0x29b   : > { %v3412_v58 = vpop.eup %3411 }
 0x29c   : > { %3175 = vmatprep.mubr.bf16.mxu0 %v3412_v58  ;;  %v3414_v54 = vpop.eup %3413  ;;  %v1633_v25 = vunpack.c.h.bf16 %v3412_v58  ;;  %v1632_v34 = vunpack.c.l.bf16 %v3412_v58  ;;  %v4566_v58 = vpop.permute.xlu0 %1840  ;;  %3425 = vpow2.f32 %v1294_v51 }
 0x29d   : > { %3176 = vmatmul.mubr.bf16.gmra.mrb[28].mxu0 %v3410_v4  ;;  %v1651_v45 = vunpack.c.h.bf16 %v3414_v54  ;;  %v1650_v19 = vunpack.c.l.bf16 %v3414_v54 }
 0x29e   : > { %1682 = vadd.xlane.f32.xlu1 %v1635_v18  ;;  %1680 = vadd.xlane.f32.xlu0 %v1634_v1  ;;  %v4568_v18 = vpop.permute.xlu1 %1845  ;;  %v5025_v1 = vld [vmem:[#allocation42_spill] sm:$0xff] }
 0x29f   : > { %v3416_v56 = vpop.eup %3415 }
 0x2a0   : > { %3207 = vmatprep.mubr.bf16.mxu1 %v3416_v56  ;;  %v1648_v3 = vunpack.c.l.bf16 %v3416_v56  ;;  %v4551_v57 = vpop.eup %3417  ;;  %v4577_v11 = vpop.permute.xlu0 %1850  ;;  %v1649_v2 = vunpack.c.h.bf16 %v3416_v56  ;;  %v5032_v56 = vsub.f32 %v5031_v9, %v4335_v12  ;;  %v1558_v12 = vld [vmem:[#allocation3 + $0x10] sm:$0xff] }
 0x2a1   : > { %3208 = vmatmul.mubr.bf16.gmra.mrb[28].mxu1 %v3414_v54  ;;  %v4564_v4 = vpop.eup %3419  ;;  %v5026_v54 = vsub.f32 %v5025_v1, %v4332_v33  ;;  %v1590_v23 = vmul.f32 %v4427_v47, %v1558_v12  ;;  %v1574_v9 = vld [vmem:[#allocation3 + $0x90] sm:$0xff]  ;;  %v1557_v12 = vld [vmem:[#allocation3 + $0x8] sm:$0xff] }
 0x2a2   : > { %1714 = vadd.xlane.f32.xlu1 %v1651_v45  ;;  %1712 = vadd.xlane.f32.xlu0 %v1650_v19  ;;  %v4574_v19 = vpop.eup %3421  ;;  %v4579_v63 = vpop.permute.xlu1 %1895  ;;  %v1296_v51 = vmul.f32 1.442695, %v5032_v56  ;;  %v1575_v56 = vld [vmem:[#allocation3 + $0x98] sm:$0xff] }
 0x2a3   : > { %v1298_v45 = vmul.f32 1.442695, %v5026_v54  ;;  %v4581_v28 = vpop.eup %3423 }
 0x2a5   : > { %3427 = vpow2.f32 %v1298_v45 }
 0x2a6   : > { %1678 = vadd.xlane.f32.xlu1 %v1633_v25  ;;  %1676 = vadd.xlane.f32.xlu0 %v1632_v34  ;;  %v4584_v25 = vpop.eup %3425  ;;  %v4586_v34 = vpop.permute.xlu0 %1900  ;;  %3429 = vpow2.f32 %v1288_v30 }
 0x2a7   : > { %5027 = vst [vmem:[#allocation15_spill] sm:$0xff] %v4584_v25  ;;  %v4588_v33 = vpop.permute.xlu1 %1905  ;;  %3431 = vpow2.f32 %v1292_v24 }
 0x2a8   : > { %3433 = vpow2.f32 %v1296_v51 }
 0x2aa   : > { %1708 = vadd.xlane.f32.xlu0 %v1648_v3  ;;  %v4594_v60 = vpop.permute.xlu0 %1910 }
 0x2ab   : > { %v4596_v5 = vpop.permute.xlu1 %1915 }
 0x2ae   : > { %v4598_v3 = vpop.permute.xlu0 %1920 }
 0x2af   : > { %v4591_v61 = vpop.eup %3427  ;;  %v4600_v13 = vpop.permute.xlu1 %1925 }
 0x2b0   : > { %v4623_v45 = vpop.eup %3429 }
 0x2b1   : > { %v4626_v15 = vpop.eup %3431 }
 0x2b2   : > { %v4605_v40 = vpop.permute.xlu0 %1870  ;;  %v4633_v32 = vpop.eup %3433 }
 0x2b3   : > { %v4607_v7 = vpop.permute.xlu1 %1865 }
 0x2b6   : > { %v4612_v17 = vpop.permute.xlu0 %1860 }
 0x2b7   : > { %1935 = vperm.xlu1 %3305, %v4551_v57   ;;  %v4614_v53 = vpop.permute.xlu1 %1855 }
 0x2ba   : > { %v4619_v1 = vpop.permute.xlu0 %1890 }
 0x2bb   : > { %5033 = vst [vmem:[#allocation11_spill] sm:$0xff] %v4619_v1  ;;  %v4621_v54 = vpop.permute.xlu1 %1885  ;;  %v1606_v1 = vmul.f32 %v4469_v49, %v1574_v9  ;;  %v1573_v49 = vld [vmem:[#allocation3 + $0x88] sm:$0xff] }
 0x2bc   : > { %5034 = vst [vmem:[#allocation16_spill] sm:$0xff] %v4621_v54 }
 0x2be   : > { %v4628_v39 = vpop.permute.xlu0 %1880 }
 0x2bf   : > { %5035 = vst [vmem:[#allocation13_spill] sm:$0xff] %v4628_v39  ;;  %v4630_v62 = vpop.permute.xlu1 %1875 }
 0x2c0   : > { %1930 = vperm.xlu0 %3306, %v4564_v4   ;;  %5036 = vst [vmem:[#allocation9_spill] sm:$0xff] %v4630_v62  ;;  %v1607_v62 = vmul.f32 %v4446_v36, %v1575_v56 }
 0x2c4   : > { %1940 = vperm.xlu0 %3306, %v4574_v19  }
 0x2c8   : > { %1950 = vperm.xlu0 %3306, %v4581_v28  }
 0x2cc   : > { %1960 = vperm.xlu0 %3306, %v4584_v25  }
 0x2d0   : > { %1970 = vperm.xlu0 %3306, %v4591_v61  }
 0x2db   : > { %1710 = vadd.xlane.f32.xlu1 %v1649_v2  ;;  %v1559_v2 = vld [vmem:[#allocation3 + $0x18] sm:$0xff] }
 0x2dc   : > { %v1591_v8 = vmul.f32 %v4405_v29, %v1559_v2  ;;  %v1556_v29 = vld [vmem:[#allocation3] sm:$0xff] }
 0x2ec   : > { %1945 = vperm.xlu1 %3305, %v4623_v45  }
 0x2f0   : > { %1955 = vperm.xlu1 %3305, %v4626_v15  }
 0x2f4   : > { %v1657_v30 = vpop.xlane.xlu0 %1656  ;;  %v1659_v24 = vpop.xlane.xlu1 %1658  ;;  %1965 = vperm.xlu1 %3305, %v4633_v32  }
 0x2f5   : > { %v1718_v51 = vadd.f32 %v1657_v30, %v1590_v23  ;;  %v1719_v39 = vadd.f32 %v1659_v24, %v1591_v8  ;;  %v1589_v23 = vmul.f32 %v4416_v46, %v1557_v12  ;;  %v1588_v8 = vmul.f32 %v4399_v50, %v1556_v29  ;;  %v1572_v24 = vld [vmem:[#allocation3 + $0x80] sm:$0xff] }
 0x2f7   : > { %1751 = vst.msk [vmem:[#allocation3 + $0x10] sm:$0xff] %vm351_vm1, %v1718_v51  ;;  %1752 = vst.msk [vmem:[#allocation3 + $0x18] sm:$0xff] %vm351_vm1, %v1719_v39 }
 0x2f8   : > { %v1689_v54 = vpop.xlane.xlu0 %1688  ;;  %v1691_v47 = vpop.xlane.xlu1 %1690 }
 0x2f9   : > { %v1734_v2 = vadd.f32 %v1689_v54, %v1606_v1  ;;  %v1735_v25 = vadd.f32 %v1691_v47, %v1607_v62  ;;  %v1604_v1 = vmul.f32 %v4461_v16, %v1572_v24  ;;  %v1563_v16 = vld [vmem:[#allocation3 + $0x38] sm:$0xff] }
 0x2fb   : > { %1767 = vst.msk [vmem:[#allocation3 + $0x90] sm:$0xff] %vm351_vm1, %v1734_v2  ;;  %1768 = vst.msk [vmem:[#allocation3 + $0x98] sm:$0xff] %vm351_vm1, %v1735_v25  ;;  %v1605_v25 = vmul.f32 %v4438_v59, %v1573_v49  ;;  %v1595_v49 = vmul.f32 %v4425_v38, %v1563_v16 }
 0x2fc   : > { %v1655_v30 = vpop.xlane.xlu0 %1654  ;;  %v1653_v39 = vpop.xlane.xlu1 %1652 }
 0x2fd   : > { %v1717_v9 = vadd.f32 %v1655_v30, %v1589_v23  ;;  %v1716_v36 = vadd.f32 %v1653_v39, %v1588_v8  ;;  %v1562_v23 = vld [vmem:[#allocation3 + $0x30] sm:$0xff] }
 0x2fe   : > { %v2396_v56 = vld [vmem:[#allocation3 + $0x10] sm:$0xff]  ;;  %v2397_v51 = vld [vmem:[#allocation3 + $0x18] sm:$0xff]  ;;  %v1594_v24 = vmul.f32 %v4448_v43, %v1562_v23 }
 0x2ff   : > { %3435 = vrcp.f32 %v2396_v56  ;;  %1750 = vst.msk [vmem:[#allocation3 + $0x8] sm:$0xff] %vm351_vm1, %v1717_v9  ;;  %1749 = vst.msk [vmem:[#allocation3] sm:$0xff] %vm351_vm1, %v1716_v36  ;;  %v1578_v56 = vld [vmem:[#allocation3 + $0xb0] sm:$0xff] }
 0x300   : > { %3437 = vrcp.f32 %v2397_v51  ;;  %v1685_v46 = vpop.xlane.xlu0 %1684  ;;  %v1687_v50 = vpop.xlane.xlu1 %1686  ;;  %v1579_v51 = vld [vmem:[#allocation3 + $0xb8] sm:$0xff] }
 0x301   : > { %v1732_v54 = vadd.f32 %v1685_v46, %v1604_v1  ;;  %v1733_v62 = vadd.f32 %v1687_v50, %v1605_v25  ;;  %v1611_v43 = vmul.f32 %v4564_v4, %v1579_v51 }
 0x302   : > { %v2541_v47 = vld [vmem:[#allocation3 + $0x90] sm:$0xff]  ;;  %v2542_v12 = vld [vmem:[#allocation3 + $0x98] sm:$0xff] }
 0x303   : > { %3439 = vrcp.f32 %v2541_v47  ;;  %1765 = vst.msk [vmem:[#allocation3 + $0x80] sm:$0xff] %vm351_vm1, %v1732_v54  ;;  %1766 = vst.msk [vmem:[#allocation3 + $0x88] sm:$0xff] %vm351_vm1, %v1733_v62  ;;  %v1610_v54 = vmul.f32 %v4485_v48, %v1578_v56  ;;  %v1560_v47 = vld [vmem:[#allocation3 + $0x20] sm:$0xff] }
 0x304   : > { %3441 = vrcp.f32 %v2542_v12  ;;  %v1561_v12 = vld [vmem:[#allocation3 + $0x28] sm:$0xff] }
 0x305   : > { %v1593_v48 = vmul.f32 %v4414_v44, %v1561_v12 }
 0x306   : > { %v2395_v29 = vld [vmem:[#allocation3 + $0x8] sm:$0xff]  ;;  %v2394_v2 = vld [vmem:[#allocation3] sm:$0xff] }
 0x307   : > { %3443 = vrcp.f32 %v2395_v29 }
 0x308   : > { %3445 = vrcp.f32 %v2394_v2 }
 0x309   : > { %v3436_v59 = vpop.eup %3435 }
 0x30a   : > { %v3438_v8 = vpop.eup %3437  ;;  %v2539_v30 = vld [vmem:[#allocation3 + $0x80] sm:$0xff]  ;;  %v2540_v39 = vld [vmem:[#allocation3 + $0x88] sm:$0xff]  ;;  %2454 = vperm.xlu1 %3305, %v3436_v59   ;;  %v1592_v59 = vmul.f32 %v4440_v52, %v1560_v47 }
 0x30b   : > { %3447 = vrcp.f32 %v2539_v30  ;;  %2459 = vperm.xlu0 %3306, %v3438_v8   ;;  %v1665_v9 = vpop.xlane.xlu0 %1664  ;;  %v1667_v36 = vpop.xlane.xlu1 %1666  ;;  %v1576_v30 = vld [vmem:[#allocation3 + $0xa0] sm:$0xff] }
 0x30c   : > { %3449 = vrcp.f32 %v2540_v39  ;;  %v1722_v1 = vadd.f32 %v1665_v9, %v1594_v24  ;;  %v1723_v25 = vadd.f32 %v1667_v36, %v1595_v49  ;;  %v1577_v39 = vld [vmem:[#allocation3 + $0xa8] sm:$0xff]  ;;  %v1608_v52 = vmul.f32 %v4477_v35, %v1576_v30  ;;  %v1564_v30 = vld [vmem:[#allocation3 + $0x40] sm:$0xff] }
 0x30d   : > { %v3440_v46 = vpop.eup %3439  ;;  %v1609_v44 = vmul.f32 %v4459_v22, %v1577_v39  ;;  %v1565_v39 = vld [vmem:[#allocation3 + $0x48] sm:$0xff] }
 0x30e   : > { %v3442_v50 = vpop.eup %3441  ;;  %1755 = vst.msk [vmem:[#allocation3 + $0x30] sm:$0xff] %vm351_vm1, %v1722_v1  ;;  %1756 = vst.msk [vmem:[#allocation3 + $0x38] sm:$0xff] %vm351_vm1, %v1723_v25 }
 0x30f   : > { %2600 = vperm.xlu0 %3306, %v3440_v46   ;;  %2605 = vperm.xlu1 %3305, %v3442_v50   ;;  %v1697_v38 = vpop.xlane.xlu0 %1696  ;;  %v1699_v62 = vpop.xlane.xlu1 %1698  ;;  %v1566_v46 = vld [vmem:[#allocation3 + $0x50] sm:$0xff]  ;;  %v1567_v50 = vld [vmem:[#allocation3 + $0x58] sm:$0xff] }
 0x310   : > { %v1738_v29 = vadd.f32 %v1697_v38, %v1610_v54  ;;  %v1739_v2 = vadd.f32 %v1699_v62, %v1611_v43  ;;  %v1598_v35 = vmul.f32 %v4491_v37, %v1566_v46  ;;  %v1599_v22 = vmul.f32 %v4467_v31, %v1567_v50 }
 0x311   : > { %v3444_v23 = vpop.eup %3443 }
 0x312   : > { %v3446_v16 = vpop.eup %3445  ;;  %1771 = vst.msk [vmem:[#allocation3 + $0xb0] sm:$0xff] %vm351_vm1, %v1738_v29  ;;  %1772 = vst.msk [vmem:[#allocation3 + $0xb8] sm:$0xff] %vm351_vm1, %v1739_v2  ;;  %v1582_v29 = vld [vmem:[#allocation3 + $0xd0] sm:$0xff]  ;;  %v1583_v2 = vld [vmem:[#allocation3 + $0xd8] sm:$0xff] }
 0x313   : > { %2449 = vperm.xlu0 %3306, %v3444_v23   ;;  %2444 = vperm.xlu1 %3305, %v3446_v16   ;;  %v1661_v4 = vpop.xlane.xlu0 %1660  ;;  %v1663_v8 = vpop.xlane.xlu1 %1662  ;;  %v1615_v37 = vmul.f32 %v4581_v28, %v1583_v2  ;;  %v1596_v28 = vmul.f32 %v4495_v26, %v1564_v30 }
 0x314   : > { %v1720_v24 = vadd.f32 %v1661_v4, %v1592_v59  ;;  %v1721_v49 = vadd.f32 %v1663_v8, %v1593_v48  ;;  %v1614_v4 = vmul.f32 %v4623_v45, %v1582_v29  ;;  %v1597_v45 = vmul.f32 %v4475_v20, %v1565_v39 }
 0x315   : > { %v3448_v9 = vpop.eup %3447  ;;  %v2400_v36 = vld [vmem:[#allocation3 + $0x30] sm:$0xff]  ;;  %v2401_v56 = vld [vmem:[#allocation3 + $0x38] sm:$0xff] }
 0x316   : > { %v3450_v51 = vpop.eup %3449  ;;  %3451 = vrcp.f32 %v2400_v36  ;;  %1753 = vst.msk [vmem:[#allocation3 + $0x20] sm:$0xff] %vm351_vm1, %v1720_v24  ;;  %1754 = vst.msk [vmem:[#allocation3 + $0x28] sm:$0xff] %vm351_vm1, %v1721_v49 }
 0x317   : > { %3453 = vrcp.f32 %v2401_v56  ;;  %2590 = vperm.xlu0 %3306, %v3448_v9   ;;  %2595 = vperm.xlu1 %3305, %v3450_v51   ;;  %v1693_v1 = vpop.xlane.xlu0 %1692  ;;  %v1695_v25 = vpop.xlane.xlu1 %1694 }
 0x318   : > { %v1736_v54 = vadd.f32 %v1693_v1, %v1608_v52  ;;  %v1737_v43 = vadd.f32 %v1695_v25, %v1609_v44  ;;  %v1580_v1 = vld [vmem:[#allocation3 + $0xc0] sm:$0xff]  ;;  %v1581_v25 = vld [vmem:[#allocation3 + $0xc8] sm:$0xff] }
 0x319   : > { %v2545_v38 = vld [vmem:[#allocation3 + $0xb0] sm:$0xff]  ;;  %v2546_v62 = vld [vmem:[#allocation3 + $0xb8] sm:$0xff]  ;;  %v1613_v26 = vmul.f32 %v4574_v19, %v1581_v25  ;;  %v1584_v25 = vld [vmem:[#allocation3 + $0xe0] sm:$0xff] }
 0x31a   : > { %3455 = vrcp.f32 %v2545_v38  ;;  %1769 = vst.msk [vmem:[#allocation3 + $0xa0] sm:$0xff] %vm351_vm1, %v1736_v54  ;;  %1770 = vst.msk [vmem:[#allocation3 + $0xa8] sm:$0xff] %vm351_vm1, %v1737_v43  ;;  %v1612_v38 = vmul.f32 %v4551_v57, %v1580_v1 }
 0x31b   : > { %3457 = vrcp.f32 %v2546_v62  ;;  %v1673_v47 = vpop.xlane.xlu0 %1672  ;;  %v1675_v12 = vpop.xlane.xlu1 %1674 }
 0x31c   : > { %v1726_v23 = vadd.f32 %v1673_v47, %v1598_v35  ;;  %v1727_v16 = vadd.f32 %v1675_v12, %v1599_v22  ;;  %v1570_v35 = vld [vmem:[#allocation3 + $0x70] sm:$0xff]  ;;  %v1571_v22 = vld [vmem:[#allocation3 + $0x78] sm:$0xff] }
 0x31d   : > { %v2398_v59 = vld [vmem:[#allocation3 + $0x20] sm:$0xff]  ;;  %v2399_v48 = vld [vmem:[#allocation3 + $0x28] sm:$0xff]  ;;  %v1602_v57 = vmul.f32 %v4498_v42, %v1570_v35  ;;  %v1603_v19 = vmul.f32 %v4483_v41, %v1571_v22 }
 0x31e   : > { %3459 = vrcp.f32 %v2398_v59  ;;  %1759 = vst.msk [vmem:[#allocation3 + $0x50] sm:$0xff] %vm351_vm1, %v1726_v23  ;;  %1760 = vst.msk [vmem:[#allocation3 + $0x58] sm:$0xff] %vm351_vm1, %v1727_v16 }
 0x31f   : > { %3461 = vrcp.f32 %v2399_v48  ;;  %v1705_v31 = vpop.xlane.xlu0 %1704  ;;  %v1707_v8 = vpop.xlane.xlu1 %1706 }
 0x320   : > { %v3452_v24 = vpop.eup %3451  ;;  %v1742_v49 = vadd.f32 %v1705_v31, %v1614_v4  ;;  %v1743_v9 = vadd.f32 %v1707_v8, %v1615_v37  ;;  %v1586_v4 = vld [vmem:[#allocation3 + $0xf0] sm:$0xff]  ;;  %v1587_v37 = vld [vmem:[#allocation3 + $0xf8] sm:$0xff] }
 0x321   : > { %v3454_v36 = vpop.eup %3453  ;;  %v2543_v56 = vld [vmem:[#allocation3 + $0xa0] sm:$0xff]  ;;  %v2544_v51 = vld [vmem:[#allocation3 + $0xa8] sm:$0xff]  ;;  %2474 = vperm.xlu1 %3305, %v3452_v24   ;;  %v1618_v42 = vmul.f32 %v4633_v32, %v1586_v4  ;;  %v1619_v41 = vmul.f32 %v4591_v61, %v1587_v37 }
 0x322   : > { %3463 = vrcp.f32 %v2543_v56  ;;  %1775 = vst.msk [vmem:[#allocation3 + $0xd0] sm:$0xff] %vm351_vm1, %v1742_v49  ;;  %1776 = vst.msk [vmem:[#allocation3 + $0xd8] sm:$0xff] %vm351_vm1, %v1743_v9  ;;  %2479 = vperm.xlu0 %3306, %v3454_v36   ;;  %v1568_v36 = vld [vmem:[#allocation3 + $0x60] sm:$0xff]  ;;  %v1569_v56 = vld [vmem:[#allocation3 + $0x68] sm:$0xff] }
 0x323   : > { %3465 = vrcp.f32 %v2544_v51  ;;  %v1669_v52 = vpop.xlane.xlu0 %1668  ;;  %v1671_v44 = vpop.xlane.xlu1 %1670  ;;  %v1601_v1 = vmul.f32 %v4489_v21, %v1569_v56  ;;  %v1798_v21 = vld [vmem:[#allocation4 + $0x88] sm:$0xff] }
 0x324   : > { %v3456_v46 = vpop.eup %3455  ;;  %v1724_v50 = vadd.f32 %v1669_v52, %v1596_v28  ;;  %v1725_v54 = vadd.f32 %v1671_v44, %v1597_v45  ;;  %v1600_v44 = vmul.f32 %v4501_v55, %v1568_v36  ;;  %v1616_v55 = vmul.f32 %v4626_v15, %v1584_v25  ;;  %v1782_v4 = vld [vmem:[#allocation4 + $0x8] sm:$0xff] }
 0x325   : > { %v3458_v43 = vpop.eup %3457 }
 0x326   : > { %1757 = vst.msk [vmem:[#allocation3 + $0x40] sm:$0xff] %vm351_vm1, %v1724_v50  ;;  %1758 = vst.msk [vmem:[#allocation3 + $0x48] sm:$0xff] %vm351_vm1, %v1725_v54  ;;  %2620 = vperm.xlu0 %3306, %v3456_v46   ;;  %2625 = vperm.xlu1 %3305, %v3458_v43   ;;  %v1799_v50 = vld [vmem:[#allocation4 + $0x90] sm:$0xff] }
 0x327   : > { %v1701_v20 = vpop.xlane.xlu0 %1700  ;;  %v1703_v62 = vpop.xlane.xlu1 %1702 }
 0x328   : > { %v3460_v47 = vpop.eup %3459  ;;  %v1740_v12 = vadd.f32 %v1701_v20, %v1612_v38  ;;  %v1741_v29 = vadd.f32 %v1703_v62, %v1613_v26  ;;  %v1797_v26 = vld [vmem:[#allocation4 + $0x80] sm:$0xff]  ;;  %v1800_v20 = vld [vmem:[#allocation4 + $0x98] sm:$0xff]  ;;  %v1991_v62 = vmul.f32 %v4588_v33, %v1799_v50 }
 0x329   : > { %v3462_v2 = vpop.eup %3461  ;;  %v2549_v23 = vld [vmem:[#allocation3 + $0xd0] sm:$0xff]  ;;  %v2550_v16 = vld [vmem:[#allocation3 + $0xd8] sm:$0xff] }
 0x32a   : > { %3467 = vrcp.f32 %v2549_v23  ;;  %1773 = vst.msk [vmem:[#allocation3 + $0xc0] sm:$0xff] %vm351_vm1, %v1740_v12  ;;  %1774 = vst.msk [vmem:[#allocation3 + $0xc8] sm:$0xff] %vm351_vm1, %v1741_v29  ;;  %2464 = vperm.xlu1 %3305, %v3460_v47   ;;  %2469 = vperm.xlu0 %3306, %v3462_v2   ;;  %v1783_v47 = vld [vmem:[#allocation4 + $0x10] sm:$0xff]  ;;  %v1989_v12 = vmul.f32 %v4579_v63, %v1797_v26  ;;  %v1781_v23 = vld [vmem:[#allocation4] sm:$0xff] }
 0x32b   : > { %3469 = vrcp.f32 %v2550_v16  ;;  %v1681_v59 = vpop.xlane.xlu0 %1680  ;;  %v1683_v48 = vpop.xlane.xlu1 %1682  ;;  %v1992_v16 = vmul.f32 %v4594_v60, %v1800_v20  ;;  %v1975_v37 = vmul.f32 %v4546_v6, %v1783_v47  ;;  %v1973_v60 = vmul.f32 %v4544_v0, %v1781_v23  ;;  %v1785_v47 = vld [vmem:[#allocation4 + $0x20] sm:$0xff] }
 0x32c   : > { %v3464_v31 = vpop.eup %3463  ;;  %v1730_v8 = vadd.f32 %v1681_v59, %v1602_v57  ;;  %v1731_v30 = vadd.f32 %v1683_v48, %v1603_v19  ;;  %v1784_v59 = vld [vmem:[#allocation4 + $0x18] sm:$0xff]  ;;  %v1990_v48 = vmul.f32 %v4586_v34, %v1798_v21  ;;  %v1974_v6 = vmul.f32 %v4539_v10, %v1782_v4 }
 0x32d   : > { %v3466_v39 = vpop.eup %3465  ;;  %v2402_v24 = vld [vmem:[#allocation3 + $0x40] sm:$0xff]  ;;  %v2403_v10 = vld [vmem:[#allocation3 + $0x48] sm:$0xff] }
 0x32e   : > { %3471 = vrcp.f32 %v2402_v24  ;;  %1763 = vst.msk [vmem:[#allocation3 + $0x70] sm:$0xff] %vm351_vm1, %v1730_v8  ;;  %1764 = vst.msk [vmem:[#allocation3 + $0x78] sm:$0xff] %vm351_vm1, %v1731_v30  ;;  %2610 = vperm.xlu0 %3306, %v3464_v31   ;;  %2615 = vperm.xlu1 %3305, %v3466_v39   ;;  %v1976_v24 = vmul.f32 %v4557_v14, %v1784_v59 }
 0x32f   : > { %v1713_v49 = vpop.xlane.xlu0 %1712  ;;  %v1715_v9 = vpop.xlane.xlu1 %1714 }
 0x330   : > { %v1746_v51 = vadd.f32 %v1713_v49, %v1618_v42  ;;  %v1747_v28 = vadd.f32 %v1715_v9, %v1619_v41 }
 0x331   : > { %v2547_v45 = vld [vmem:[#allocation3 + $0xc0] sm:$0xff]  ;;  %v2548_v52 = vld [vmem:[#allocation3 + $0xc8] sm:$0xff] }
 0x332   : > { %3473 = vrcp.f32 %v2547_v45  ;;  %1779 = vst.msk [vmem:[#allocation3 + $0xf0] sm:$0xff] %vm351_vm1, %v1746_v51  ;;  %1780 = vst.msk [vmem:[#allocation3 + $0xf8] sm:$0xff] %vm351_vm1, %v1747_v28  ;;  %v1803_v28 = vld [vmem:[#allocation4 + $0xb0] sm:$0xff]  ;;  %v1801_v45 = vld [vmem:[#allocation4 + $0xa0] sm:$0xff] }
 0x333   : > { %3475 = vrcp.f32 %v2548_v52  ;;  %v1677_v32 = vpop.xlane.xlu0 %1676  ;;  %v1679_v61 = vpop.xlane.xlu1 %1678  ;;  %v1804_v52 = vld [vmem:[#allocation4 + $0xb8] sm:$0xff] }
 0x334   : > { %v3468_v46 = vpop.eup %3467  ;;  %v1728_v54 = vadd.f32 %v1677_v32, %v1600_v44  ;;  %v1729_v43 = vadd.f32 %v1679_v61, %v1601_v1  ;;  %v1802_v1 = vld [vmem:[#allocation4 + $0xa8] sm:$0xff]  ;;  %v1995_v32 = vmul.f32 %v4600_v13, %v1803_v28  ;;  %v2405_v61 = vld [vmem:[#allocation3 + $0x58] sm:$0xff] }
 0x335   : > { %v3470_v38 = vpop.eup %3469  ;;  %2640 = vperm.xlu0 %3306, %v3468_v46   ;;  %v1993_v46 = vmul.f32 %v4596_v5, %v1801_v45  ;;  %v1994_v26 = vmul.f32 %v4598_v3, %v1802_v1  ;;  %v2409_v21 = vld [vmem:[#allocation3 + $0x78] sm:$0xff]  ;;  %v1786_v3 = vld [vmem:[#allocation4 + $0x28] sm:$0xff] }
 0x336   : > { %1761 = vst.msk [vmem:[#allocation3 + $0x60] sm:$0xff] %vm351_vm1, %v1728_v54  ;;  %1762 = vst.msk [vmem:[#allocation3 + $0x68] sm:$0xff] %vm351_vm1, %v1729_v43  ;;  %2645 = vperm.xlu1 %3305, %v3470_v38   ;;  %v1806_v28 = vld [vmem:[#allocation4 + $0xc8] sm:$0xff] }
 0x337   : > { %v1709_v35 = vpop.xlane.xlu0 %1708 }
 0x338   : > { %v3472_v22 = vpop.eup %3471  ;;  %v1744_v29 = vadd.f32 %v1709_v35, %v1616_v55  ;;  %v3197_v2 = vpop.f32.mrb[16].mxu1 }
 0x339   : > { %v2313_v57 = vadd.f32 %v3197_v2, %v1991_v62  ;;  %v2232_v19 = vpop.f32.mrb[17].mxu1  ;;  %v2553_v51 = vld [vmem:[#allocation3 + $0xf0] sm:$0xff] }
 0x33a   : > { %1777 = vst.msk [vmem:[#allocation3 + $0xe0] sm:$0xff] %vm351_vm1, %v1744_v29  ;;  %v2311_v15 = vadd.f32 %v2232_v19, %v1989_v12  ;;  %2484 = vperm.xlu1 %3305, %v3472_v22   ;;  %v3198_v33 = vpop.f32.mrb[18].mxu1  ;;  %v1787_v22 = vld [vmem:[#allocation4 + $0x30] sm:$0xff]  ;;  %v1788_v12 = vld [vmem:[#allocation4 + $0x38] sm:$0xff] }
 0x33b   : > { %2345 = vst.msk [vmem:[#allocation4 + $0x90] sm:$0xff] %vm416_vm0, %v2313_v57  ;;  %v2314_v63 = vadd.f32 %v3198_v33, %v1992_v16  ;;  %v2235_v31 = vpop.f32.mrb[19].mxu1  ;;  %v1979_v29 = vmul.f32 %v4568_v18, %v1787_v22  ;;  %v1977_v16 = vmul.f32 %v4559_v27, %v1785_v47  ;;  %v1980_v19 = vmul.f32 %v4577_v11, %v1788_v12  ;;  %v1791_v11 = vld [vmem:[#allocation4 + $0x50] sm:$0xff]  ;;  %v1794_v47 = vld [vmem:[#allocation4 + $0x68] sm:$0xff]  ;;  %v5038_v12 = vld [vmem:[#allocation16_spill] sm:$0xff] }
 0x33c   : > { %v3474_v8 = vpop.eup %3473  ;;  %2343 = vst.msk [vmem:[#allocation4 + $0x80] sm:$0xff] %vm416_vm0, %v2311_v15  ;;  %v2312_v30 = vadd.f32 %v2235_v31, %v1990_v48  ;;  %v3165_v39 = vpop.f32.mrb[16].mxu0  ;;  %v1978_v15 = vmul.f32 %v4566_v58, %v1786_v3  ;;  %v1789_v58 = vld [vmem:[#allocation4 + $0x40] sm:$0xff] }
 0x33d   : > { %v3476_v34 = vpop.eup %3475  ;;  %2346 = vst.msk [vmem:[#allocation4 + $0x98] sm:$0xff] %vm416_vm0, %v2314_v63  ;;  %v2297_v42 = vadd.f32 %v3165_v39, %v1975_v37  ;;  %v2087_v41 = vpop.f32.mrb[17].mxu0  ;;  %2630 = vperm.xlu0 %3306, %v3474_v8   ;;  %v2407_v2 = vld [vmem:[#allocation3 + $0x68] sm:$0xff]  ;;  %v1983_v39 = vmul.f32 %v4607_v7, %v1791_v11 }
 0x33e   : > { %2344 = vst.msk [vmem:[#allocation4 + $0x88] sm:$0xff] %vm416_vm0, %v2312_v30  ;;  %v2295_v49 = vadd.f32 %v2087_v41, %v1973_v60  ;;  %2635 = vperm.xlu1 %3305, %v3476_v34   ;;  %v3166_v9 = vpop.f32.mrb[18].mxu0  ;;  %v1792_v60 = vld [vmem:[#allocation4 + $0x58] sm:$0xff]  ;;  %v1790_v30 = vld [vmem:[#allocation4 + $0x48] sm:$0xff] }
 0x33f   : > { %2329 = vst.msk [vmem:[#allocation4 + $0x10] sm:$0xff] %vm416_vm0, %v2297_v42  ;;  %v2298_v0 = vadd.f32 %v3166_v9, %v1976_v24  ;;  %v2090_v36 = vpop.f32.mrb[19].mxu0  ;;  %v1931_v44 = vpop.permute.xlu0 %1930  ;;  %v1981_v24 = vmul.f32 %v4614_v53, %v1789_v58  ;;  %v1984_v41 = vmul.f32 %v4605_v40, %v1792_v60  ;;  %v1810_v58 = vld [vmem:[#allocation4 + $0xe8] sm:$0xff] }
 0x340   : > { %2327 = vst.msk [vmem:[#allocation4] sm:$0xff] %vm416_vm0, %v2295_v49  ;;  %v2296_v56 = vadd.f32 %v2090_v36, %v1974_v6  ;;  %v1996_v54 = vmul.f32 %v1931_v44, %v1804_v52  ;;  %v1805_v6 = vld [vmem:[#allocation4 + $0xc0] sm:$0xff]  ;;  %v1936_v49 = vpop.permute.xlu1 %1935  ;;  %v1982_v36 = vmul.f32 %v4612_v17, %v1790_v30  ;;  %v1585_v44 = vld [vmem:[#allocation3 + $0xe8] sm:$0xff] }
 0x341   : > { %v2551_v14 = vld [vmem:[#allocation3 + $0xe0] sm:$0xff]  ;;  %2330 = vst.msk [vmem:[#allocation4 + $0x18] sm:$0xff] %vm416_vm0, %v2298_v0  ;;  %v1997_v53 = vmul.f32 %v1936_v49, %v1805_v6 }
 0x342   : > { %3477 = vrcp.f32 %v2551_v14  ;;  %2328 = vst.msk [vmem:[#allocation4 + $0x8] sm:$0xff] %vm416_vm0, %v2296_v56  ;;  %v1808_v56 = vld [vmem:[#allocation4 + $0xd8] sm:$0xff] }
 0x343   : > { %3479 = vrcp.f32 %v2553_v51  ;;  %v1941_v8 = vpop.permute.xlu0 %1940 }
 0x344   : > { %3481 = vrcp.f32 %v2403_v10  ;;  %v1998_v17 = vmul.f32 %v1941_v8, %v1806_v28  ;;  %v1811_v8 = vld [vmem:[#allocation4 + $0xf0] sm:$0xff] }
 0x345   : > { %3483 = vrcp.f32 %v2405_v61  ;;  %v2404_v28 = vld [vmem:[#allocation3 + $0x50] sm:$0xff] }
 0x346   : > { %3485 = vrcp.f32 %v2409_v21  ;;  %v1795_v21 = vld [vmem:[#allocation4 + $0x70] sm:$0xff] }
 0x347   : > { %3487 = vrcp.f32 %v2407_v2  ;;  %v1951_v14 = vpop.permute.xlu0 %1950  ;;  %v1987_v3 = vmul.f32 %v5038_v12, %v1795_v21  ;;  %v5039_v2 = vld [vmem:[#allocation9_spill] sm:$0xff] }
 0x348   : > { %v2000_v1 = vmul.f32 %v1951_v14, %v1808_v56 }
 0x34c   : > { %v3478_v25 = vpop.eup %3477  ;;  %v3201_v50 = vpop.f32.mrb[20].mxu1 }
 0x34d   : > { %v2317_v43 = vadd.f32 %v3201_v50, %v1995_v32  ;;  %v2248_v38 = vpop.f32.mrb[21].mxu1  ;;  %2650 = vperm.xlu0 %3306, %v3478_v25   ;;  %v3480_v13 = vpop.eup %3479 }
 0x34e   : > { %v2315_v20 = vadd.f32 %v2248_v38, %v1993_v46  ;;  %v3202_v55 = vpop.f32.mrb[22].mxu1  ;;  %v3482_v23 = vpop.eup %3481 }
 0x34f   : > { %2349 = vst.msk [vmem:[#allocation4 + $0xb0] sm:$0xff] %vm416_vm0, %v2317_v43  ;;  %v2318_v62 = vadd.f32 %v3202_v55, %v1996_v54  ;;  %v2251_v35 = vpop.f32.mrb[23].mxu1  ;;  %v3484_v18 = vpop.eup %3483  ;;  %v5037_v54 = vld [vmem:[#allocation15_spill] sm:$0xff] }
 0x350   : > { %2347 = vst.msk [vmem:[#allocation4 + $0xa0] sm:$0xff] %vm416_vm0, %v2315_v20  ;;  %v2316_v5 = vadd.f32 %v2251_v35, %v1994_v26  ;;  %v3486_v27 = vpop.eup %3485  ;;  %v1617_v43 = vmul.f32 %v5037_v54, %v1585_v44  ;;  %v1807_v55 = vld [vmem:[#allocation4 + $0xd0] sm:$0xff] }
 0x351   : > { %2350 = vst.msk [vmem:[#allocation4 + $0xb8] sm:$0xff] %vm416_vm0, %v2318_v62  ;;  %2660 = vperm.xlu0 %3306, %v3480_v13   ;;  %v3488_v34 = vpop.eup %3487  ;;  %v1961_v62 = vpop.permute.xlu0 %1960  ;;  %v1793_v13 = vld [vmem:[#allocation4 + $0x60] sm:$0xff]  ;;  %v2574_v54 = vld [vmem:[#allocation4 + $0x90] sm:$0xff] }
 0x352   : > { %2348 = vst.msk [vmem:[#allocation4 + $0xa8] sm:$0xff] %vm416_vm0, %v2316_v5  ;;  %v1796_v5 = vld [vmem:[#allocation4 + $0x78] sm:$0xff] }
 0x354   : > { %v3169_v57 = vpop.f32.mrb[20].mxu0 }
 0x355   : > { %v2301_v59 = vadd.f32 %v3169_v57, %v1979_v29  ;;  %v2103_v48 = vpop.f32.mrb[21].mxu0  ;;  %2489 = vperm.xlu0 %3306, %v3482_v23   ;;  %v1985_v23 = vmul.f32 %v5039_v2, %v1793_v13 }
 0x356   : > { %v2299_v33 = vadd.f32 %v2103_v48, %v1977_v16  ;;  %v3170_v4 = vpop.f32.mrb[22].mxu0  ;;  %v2578_v12 = vld [vmem:[#allocation4 + $0xb0] sm:$0xff] }
 0x357   : > { %2333 = vst.msk [vmem:[#allocation4 + $0x30] sm:$0xff] %vm416_vm0, %v2301_v59  ;;  %v2302_v37 = vadd.f32 %v3170_v4, %v1980_v19  ;;  %v2106_v63 = vpop.f32.mrb[23].mxu0  ;;  %v5040_v19 = vld [vmem:[#allocation11_spill] sm:$0xff]  ;;  %v5041_v4 = vld [vmem:[#allocation13_spill] sm:$0xff] }
 0x358   : > { %2331 = vst.msk [vmem:[#allocation4 + $0x20] sm:$0xff] %vm416_vm0, %v2299_v33  ;;  %v2300_v31 = vadd.f32 %v2106_v63, %v1978_v15  ;;  %v1988_v59 = vmul.f32 %v5040_v19, %v1796_v5  ;;  %v1809_v15 = vld [vmem:[#allocation4 + $0xe0] sm:$0xff]  ;;  %v1812_v63 = vld [vmem:[#allocation4 + $0xf8] sm:$0xff] }
 0x359   : > { %2334 = vst.msk [vmem:[#allocation4 + $0x38] sm:$0xff] %vm416_vm0, %v2302_v37  ;;  %2499 = vperm.xlu0 %3306, %v3484_v18   ;;  %v1986_v37 = vmul.f32 %v5041_v4, %v1794_v47  ;;  %v1971_v18 = vpop.permute.xlu0 %1970 }
 0x35a   : > { %2332 = vst.msk [vmem:[#allocation4 + $0x28] sm:$0xff] %vm416_vm0, %v2300_v31  ;;  %v2004_v6 = vmul.f32 %v1971_v18, %v1812_v63 }
 0x35d   : > { %2519 = vperm.xlu0 %3306, %v3486_v27  }
 0x360   : > { %v3173_v42 = vpop.f32.mrb[24].mxu0 }
 0x361   : > { %v2305_v9 = vadd.f32 %v3173_v42, %v1983_v39  ;;  %v2119_v0 = vpop.f32.mrb[25].mxu0  ;;  %2509 = vperm.xlu0 %3306, %v3488_v34   ;;  %v2554_v39 = vld [vmem:[#allocation3 + $0xf8] sm:$0xff] }
 0x362   : > { %v2303_v51 = vadd.f32 %v2119_v0, %v1981_v24  ;;  %v3174_v10 = vpop.f32.mrb[26].mxu0  ;;  %v2002_v0 = vmul.f32 %v1961_v62, %v1810_v58  ;;  %v2573_v62 = vld [vmem:[#allocation4 + $0x88] sm:$0xff] }
 0x363   : > { %2337 = vst.msk [vmem:[#allocation4 + $0x50] sm:$0xff] %vm416_vm0, %v2305_v9  ;;  %v2306_v7 = vadd.f32 %v3174_v10, %v1984_v41  ;;  %v2122_v45 = vpop.f32.mrb[27].mxu0 }
 0x364   : > { %2335 = vst.msk [vmem:[#allocation4 + $0x40] sm:$0xff] %vm416_vm0, %v2303_v51  ;;  %v2304_v40 = vadd.f32 %v2122_v45, %v1982_v36  ;;  %v3205_v52 = vpop.f32.mrb[24].mxu1  ;;  %v2408_v45 = vld [vmem:[#allocation3 + $0x70] sm:$0xff] }
 0x365   : > { %2338 = vst.msk [vmem:[#allocation4 + $0x58] sm:$0xff] %vm416_vm0, %v2306_v7  ;;  %v2264_v32 = vpop.f32.mrb[25].mxu1 }
 0x366   : > { %2336 = vst.msk [vmem:[#allocation4 + $0x48] sm:$0xff] %vm416_vm0, %v2304_v40  ;;  %v2319_v61 = vadd.f32 %v2264_v32, %v1997_v53  ;;  %v3206_v25 = vpop.f32.mrb[26].mxu1  ;;  %v2406_v40 = vld [vmem:[#allocation3 + $0x60] sm:$0xff] }
 0x367   : > { %v2322_v46 = vadd.f32 %v3206_v25, %v2000_v1  ;;  %v2267_v50 = vpop.f32.mrb[27].mxu1 }
 0x368   : > { %2351 = vst.msk [vmem:[#allocation4 + $0xc0] sm:$0xff] %vm416_vm0, %v2319_v61  ;;  %v2320_v38 = vadd.f32 %v2267_v50, %v1998_v17  ;;  %v1711_v26 = vpop.xlane.xlu1 %1710 }
 0x369   : > { %2354 = vst.msk [vmem:[#allocation4 + $0xd8] sm:$0xff] %vm416_vm0, %v2322_v46  ;;  %v1745_v20 = vadd.f32 %v1711_v26, %v1617_v43  ;;  %v2575_v46 = vld [vmem:[#allocation4 + $0x98] sm:$0xff] }
 0x36a   : > { %2352 = vst.msk [vmem:[#allocation4 + $0xc8] sm:$0xff] %vm416_vm0, %v2320_v38 }
 0x36b   : > { %1778 = vst.msk [vmem:[#allocation3 + $0xe8] sm:$0xff] %vm351_vm1, %v1745_v20 }
 0x36c   : > { %v1946_v35 = vpop.permute.xlu1 %1945 }
 0x36d   : > { %v1999_v22 = vmul.f32 %v1946_v35, %v1807_v55  ;;  %v2572_v55 = vld [vmem:[#allocation4 + $0x80] sm:$0xff] }
 0x36f   : > { %v2321_v29 = vadd.f32 %v3205_v52, %v1999_v22 }
 0x370   : > { %v3177_v16 = vpop.f32.mrb[28].mxu0  ;;  %v1956_v57 = vpop.permute.xlu1 %1955 }
 0x371   : > { %2353 = vst.msk [vmem:[#allocation4 + $0xd0] sm:$0xff] %vm416_vm0, %v2321_v29  ;;  %v2309_v48 = vadd.f32 %v3177_v16, %v1987_v3  ;;  %v2135_v33 = vpop.f32.mrb[29].mxu0  ;;  %v2001_v34 = vmul.f32 %v1956_v57, %v1809_v15  ;;  %v2579_v29 = vld [vmem:[#allocation4 + $0xb8] sm:$0xff]  ;;  %v2577_v15 = vld [vmem:[#allocation4 + $0xa8] sm:$0xff] }
 0x372   : > { %v2552_v31 = vld [vmem:[#allocation3 + $0xe8] sm:$0xff]  ;;  %v2307_v27 = vadd.f32 %v2135_v33, %v1985_v23  ;;  %v3178_v11 = vpop.f32.mrb[30].mxu0 }
 0x373   : > { %3489 = vrcp.f32 %v2552_v31  ;;  %2341 = vst.msk [vmem:[#allocation4 + $0x70] sm:$0xff] %vm416_vm0, %v2309_v48  ;;  %v2310_v60 = vadd.f32 %v3178_v11, %v1988_v59  ;;  %v2138_v30 = vpop.f32.mrb[31].mxu0  ;;  %v2576_v59 = vld [vmem:[#allocation4 + $0xa0] sm:$0xff] }
 0x374   : > { %2339 = vst.msk [vmem:[#allocation4 + $0x60] sm:$0xff] %vm416_vm0, %v2307_v27  ;;  %v2308_v24 = vadd.f32 %v2138_v30, %v1986_v37  ;;  %v3209_v42 = vpop.f32.mrb[28].mxu1  ;;  %v1966_v41 = vpop.permute.xlu1 %1965  ;;  %3491 = vrcp.f32 %v2554_v39  ;;  %v2583_v27 = vld [vmem:[#allocation4 + $0xd8] sm:$0xff]  ;;  %v2580_v30 = vld [vmem:[#allocation4 + $0xc0] sm:$0xff] }
 0x375   : > { %2342 = vst.msk [vmem:[#allocation4 + $0x78] sm:$0xff] %vm416_vm0, %v2310_v60  ;;  %v2003_v49 = vmul.f32 %v1966_v41, %v1811_v8  ;;  %v2280_v9 = vpop.f32.mrb[29].mxu1  ;;  %3493 = vrcp.f32 %v2404_v28 }
 0x376   : > { %2340 = vst.msk [vmem:[#allocation4 + $0x68] sm:$0xff] %vm416_vm0, %v2308_v24  ;;  %v2323_v36 = vadd.f32 %v2280_v9, %v2001_v34  ;;  %v3210_v56 = vpop.f32.mrb[30].mxu1  ;;  %3495 = vrcp.f32 %v2408_v45  ;;  %v2581_v34 = vld [vmem:[#allocation4 + $0xc8] sm:$0xff] }
 0x377   : > { %v2325_v14 = vadd.f32 %v3209_v42, %v2003_v49  ;;  %v2326_v51 = vadd.f32 %v3210_v56, %v2004_v6  ;;  %v2283_v10 = vpop.f32.mrb[31].mxu1  ;;  %3497 = vrcp.f32 %v2406_v40 }
 0x378   : > { %2355 = vst.msk [vmem:[#allocation4 + $0xe0] sm:$0xff] %vm416_vm0, %v2323_v36  ;;  %v2324_v7 = vadd.f32 %v2283_v10, %v2002_v0  ;;  %v2582_v18 = vld [vmem:[#allocation4 + $0xd0] sm:$0xff] }
 0x379   : > { %2357 = vst.msk [vmem:[#allocation4 + $0xf0] sm:$0xff] %vm416_vm0, %v2325_v14  ;;  %2358 = vst.msk [vmem:[#allocation4 + $0xf8] sm:$0xff] %vm416_vm0, %v2326_v51 }
 0x37a   : > { %2356 = vst.msk [vmem:[#allocation4 + $0xe8] sm:$0xff] %vm416_vm0, %v2324_v7 }
 0x37d   : > { %v3490_v53 = vpop.eup %3489 }
 0x37e   : > { %2655 = vperm.xlu1 %3305, %v3490_v53   ;;  %v3492_v52 = vpop.eup %3491  ;;  %v2429_v53 = vld [vmem:[#allocation4 + $0x18] sm:$0xff] }
 0x37f   : > { %v3494_v44 = vpop.eup %3493  ;;  %v2584_v6 = vld [vmem:[#allocation4 + $0xe0] sm:$0xff] }
 0x380   : > { %v3496_v1 = vpop.eup %3495  ;;  %v2586_v0 = vld [vmem:[#allocation4 + $0xf0] sm:$0xff]  ;;  %v2587_v40 = vld [vmem:[#allocation4 + $0xf8] sm:$0xff] }
 0x381   : > { %v3498_v61 = vpop.eup %3497  ;;  %v2585_v10 = vld [vmem:[#allocation4 + $0xe8] sm:$0xff] }
 0x382   : > { %2665 = vperm.xlu1 %3305, %v3492_v52  }
 0x386   : > { %2494 = vperm.xlu1 %3305, %v3494_v44  }
 0x389   : > { %v4755_v32 = vpop.permute.xlu1 %2454 }
 0x38a   : > { %v4757_v17 = vpop.permute.xlu0 %2459  ;;  %2514 = vperm.xlu1 %3305, %v3496_v1  }
 0x38b   : > { %v2525_v44 = vmul.f32 %v4757_v17, %v2429_v53  ;;  %v2439_v53 = vld [vmem:[#allocation4 + $0x68] sm:$0xff] }
 0x38e   : > { %v2601_v25 = vpop.permute.xlu0 %2600  ;;  %v2606_v50 = vpop.permute.xlu1 %2605  ;;  %2504 = vperm.xlu1 %3305, %v3498_v61  }
 0x38f   : > { %v2671_v43 = vmul.f32 %v2606_v50, %v2575_v46  ;;  %v2670_v38 = vmul.f32 %v2601_v25, %v2574_v54  ;;  %v2427_v50 = vld [vmem:[#allocation4 + $0x8] sm:$0xff] }
 0x391   : > { %2706 = vrot.lane.b32.xlu0 %v2671_v43, %s3598_s29 }
 0x392   : > { %v4760_v26 = vpop.permute.xlu0 %2449  ;;  %v4762_v20 = vpop.permute.xlu1 %2444  ;;  %2704 = vrot.lane.b32.xlu1 %v2670_v38, %s3598_s29 }
 0x393   : > { %v2523_v43 = vmul.f32 %v4760_v26, %v2427_v50 }
 0x396   : > { %v2591_v21 = vpop.permute.xlu0 %2590  ;;  %v2596_v35 = vpop.permute.xlu1 %2595 }
 0x397   : > { %v2668_v13 = vmul.f32 %v2591_v21, %v2572_v55  ;;  %v2669_v22 = vmul.f32 %v2596_v35, %v2573_v62  ;;  %v2428_v21 = vld [vmem:[#allocation4 + $0x10] sm:$0xff] }
 0x398   : > { %v2524_v62 = vmul.f32 %v4755_v32, %v2428_v21 }
 0x399   : > { %2700 = vrot.lane.b32.xlu1 %v2668_v13, %s3598_s29  ;;  %2702 = vrot.lane.b32.xlu0 %v2669_v22, %s3598_s29  ;;  %v2426_v22 = vld [vmem:[#allocation4] sm:$0xff] }
 0x3a0   : > { %v4767_v5 = vpop.permute.xlu1 %2474 }
 0x3a1   : > { %v4769_v47 = vpop.permute.xlu0 %2479 }
 0x3a5   : > { %v2621_v3 = vpop.permute.xlu0 %2620  ;;  %v2626_v2 = vpop.permute.xlu1 %2625 }
 0x3a6   : > { %v2674_v23 = vmul.f32 %v2621_v3, %v2578_v12  ;;  %v2675_v16 = vmul.f32 %v2626_v2, %v2579_v29  ;;  %v2522_v12 = vmul.f32 %v4762_v20, %v2426_v22  ;;  %v2433_v29 = vld [vmem:[#allocation4 + $0x38] sm:$0xff]  ;;  %v2432_v2 = vld [vmem:[#allocation4 + $0x30] sm:$0xff]  ;;  %v2431_v20 = vld [vmem:[#allocation4 + $0x28] sm:$0xff] }
 0x3a7   : > { %v2528_v32 = vmul.f32 %v4767_v5, %v2432_v2 }
 0x3a8   : > { %2712 = vrot.lane.b32.xlu1 %v2674_v23, %s3598_s29  ;;  %2714 = vrot.lane.b32.xlu0 %v2675_v16, %s3598_s29  ;;  %v2529_v23 = vmul.f32 %v4769_v47, %v2433_v29 }
 0x3a9   : > { %v4773_v57 = vpop.permute.xlu0 %2469  ;;  %v4775_v19 = vpop.permute.xlu1 %2464 }
 0x3ad   : > { %v2611_v48 = vpop.permute.xlu0 %2610  ;;  %v2616_v33 = vpop.permute.xlu1 %2615 }
 0x3ae   : > { %v2672_v4 = vmul.f32 %v2611_v48, %v2576_v59  ;;  %v2673_v37 = vmul.f32 %v2616_v33, %v2577_v15  ;;  %v2430_v33 = vld [vmem:[#allocation4 + $0x20] sm:$0xff] }
 0x3b0   : > { %2708 = vrot.lane.b32.xlu1 %v2672_v4, %s3598_s29  ;;  %2710 = vrot.lane.b32.xlu0 %v2673_v37, %s3598_s29  ;;  %v2527_v4 = vmul.f32 %v4773_v57, %v2431_v20  ;;  %v2526_v37 = vmul.f32 %v4775_v19, %v2430_v33 }
 0x3b4   : > { %v2641_v63 = vpop.permute.xlu0 %2640 }
 0x3b5   : > { %v2678_v31 = vmul.f32 %v2641_v63, %v2582_v18  ;;  %v2646_v11 = vpop.permute.xlu1 %2645 }
 0x3b6   : > { %v2679_v8 = vmul.f32 %v2646_v11, %v2583_v27  ;;  %v2437_v27 = vld [vmem:[#allocation4 + $0x58] sm:$0xff] }
 0x3b7   : > { %2720 = vrot.lane.b32.xlu1 %v2678_v31, %s3598_s29  ;;  %v2436_v31 = vld [vmem:[#allocation4 + $0x50] sm:$0xff] }
 0x3b8   : > { %2722 = vrot.lane.b32.xlu0 %v2679_v8, %s3598_s29 }
 0x3b9   : > { %v4781_v58 = vpop.permute.xlu1 %2484 }
 0x3bc   : > { %v2631_v60 = vpop.permute.xlu0 %2630 }
 0x3bd   : > { %v2676_v39 = vmul.f32 %v2631_v60, %v2580_v30  ;;  %v2636_v24 = vpop.permute.xlu1 %2635 }
 0x3be   : > { %v2677_v42 = vmul.f32 %v2636_v24, %v2581_v34  ;;  %v2435_v24 = vld [vmem:[#allocation4 + $0x48] sm:$0xff] }
 0x3bf   : > { %2716 = vrot.lane.b32.xlu1 %v2676_v39, %s3598_s29  ;;  %v2434_v39 = vld [vmem:[#allocation4 + $0x40] sm:$0xff] }
 0x3c0   : > { %2718 = vrot.lane.b32.xlu0 %v2677_v42, %s3598_s29  ;;  %v2530_v34 = vmul.f32 %v4781_v58, %v2434_v39 }
 0x3cc   : > { %v2651_v41 = vpop.permute.xlu0 %2650 }
 0x3cd   : > { %v2680_v49 = vmul.f32 %v2651_v41, %v2584_v6 }
 0x3cf   : > { %2724 = vrot.lane.b32.xlu1 %v2680_v49, %s3598_s29 }
 0x3d0   : > { %v2661_v9 = vpop.permute.xlu0 %2660 }
 0x3d1   : > { %v2682_v36 = vmul.f32 %v2661_v9, %v2586_v0  ;;  %v2438_v0 = vld [vmem:[#allocation4 + $0x60] sm:$0xff] }
 0x3d3   : > { %2728 = vrot.lane.b32.xlu1 %v2682_v36, %s3598_s29 }
 0x3d4   : > { %v4787_v56 = vpop.permute.xlu0 %2489 }
 0x3d5   : > { %v2531_v42 = vmul.f32 %v4787_v56, %v2435_v24 }
 0x3d8   : > { %v2500_v14 = vpop.permute.xlu0 %2499 }
 0x3d9   : > { %v2533_v8 = vmul.f32 %v2500_v14, %v2437_v27 }
 0x3dc   : > { %v4789_v51 = vpop.permute.xlu0 %2519 }
 0x3e0   : > { %v4792_v45 = vpop.permute.xlu0 %2509 }
 0x3fd   : > { %v2656_v28 = vpop.permute.xlu1 %2655 }
 0x3fe   : > { %v2681_v7 = vmul.f32 %v2656_v28, %v2585_v10  ;;  %v2440_v10 = vld [vmem:[#allocation4 + $0x70] sm:$0xff] }
 0x400   : > { %2726 = vrot.lane.b32.xlu0 %v2681_v7, %s3598_s29 }
 0x401   : > { %v2666_v52 = vpop.permute.xlu1 %2665 }
 0x402   : > { %v2683_v1 = vmul.f32 %v2666_v52, %v2587_v40  ;;  %v2535_v40 = vmul.f32 %v4792_v45, %v2439_v53 }
 0x403   : > { %v2707_v61 = vpop.permute.xlu0 %2706 }
 0x404   : > { %v2751_v25 = vsel %vm416_vm0, %v2525_v44, %v2707_v61  ;;  %2730 = vrot.lane.b32.xlu0 %v2683_v1, %s3598_s29  ;;  %v2441_v1 = vld [vmem:[#allocation4 + $0x78] sm:$0xff] }
 0x405   : > { %2767 = vst [vmem:[%s4800_s6 + $0x18] sm:$0xff] %v2751_v25  ;;  %v2495_v46 = vpop.permute.xlu1 %2494  ;;  %v2537_v61 = vmul.f32 %v4789_v51, %v2441_v1 }
 0x406   : > { %v2532_v11 = vmul.f32 %v2495_v46, %v2436_v31 }
 0x409   : > { %v2515_v54 = vpop.permute.xlu1 %2514 }
 0x40a   : > { %v2536_v56 = vmul.f32 %v2515_v54, %v2440_v10 }
 0x40b   : > { %v2703_v38 = vpop.permute.xlu0 %2702 }
 0x40c   : > { %v2749_v17 = vsel %vm416_vm0, %v2523_v43, %v2703_v38 }
 0x40d   : > { %2765 = vst [vmem:[%s4800_s6 + $0x8] sm:$0xff] %v2749_v17  ;;  %v2505_v55 = vpop.permute.xlu1 %2504 }
 0x40e   : > { %v2534_v36 = vmul.f32 %v2505_v55, %v2438_v0 }
 0x411   : > { %v2705_v35 = vpop.permute.xlu1 %2704 }
 0x412   : > { %v2750_v13 = vsel %vm416_vm0, %v2524_v62, %v2705_v35 }
 0x413   : > { %2766 = vst [vmem:[%s4800_s6 + $0x10] sm:$0xff] %v2750_v13 }
 0x415   : > { %v2701_v3 = vpop.permute.xlu1 %2700 }
 0x416   : > { %v2748_v26 = vsel %vm416_vm0, %v2522_v12, %v2701_v3 }
 0x417   : > { %2764 = vst [vmem:[%s4800_s6] sm:$0xff] %v2748_v26 }
 0x41a   : > { %v2715_v16 = vpop.permute.xlu0 %2714  ;;  %v2713_v59 = vpop.permute.xlu1 %2712 }
 0x41b   : > { %v2755_v48 = vsel %vm416_vm0, %v2529_v23, %v2715_v16  ;;  %v2754_v15 = vsel %vm416_vm0, %v2528_v32, %v2713_v59 }
 0x41c   : > { %2771 = vst [vmem:[%s4800_s6 + $0x38] sm:$0xff] %v2755_v48  ;;  %2770 = vst [vmem:[%s4800_s6 + $0x30] sm:$0xff] %v2754_v15 }
 0x422   : > { %v2711_v47 = vpop.permute.xlu0 %2710  ;;  %v2709_v63 = vpop.permute.xlu1 %2708 }
 0x423   : > { %v2753_v5 = vsel %vm416_vm0, %v2527_v4, %v2711_v47  ;;  %v2752_v18 = vsel %vm416_vm0, %v2526_v37, %v2709_v63 }
 0x424   : > { %2769 = vst [vmem:[%s4800_s6 + $0x28] sm:$0xff] %v2753_v5  ;;  %2768 = vst [vmem:[%s4800_s6 + $0x20] sm:$0xff] %v2752_v18 }
 0x429   : > { %v2721_v60 = vpop.permute.xlu1 %2720 }
 0x42a   : > { %v2723_v57 = vpop.permute.xlu0 %2722  ;;  %v2758_v30 = vsel %vm416_vm0, %v2532_v11, %v2721_v60 }
 0x42b   : > { %v2759_v19 = vsel %vm416_vm0, %v2533_v8, %v2723_v57  ;;  %2774 = vst [vmem:[%s4800_s6 + $0x50] sm:$0xff] %v2758_v30 }
 0x42c   : > { %2775 = vst [vmem:[%s4800_s6 + $0x58] sm:$0xff] %v2759_v19 }
 0x431   : > { %v2717_v41 = vpop.permute.xlu1 %2716 }
 0x432   : > { %v2719_v6 = vpop.permute.xlu0 %2718  ;;  %v2756_v49 = vsel %vm416_vm0, %v2530_v34, %v2717_v41 }
 0x433   : > { %v2757_v9 = vsel %vm416_vm0, %v2531_v42, %v2719_v6  ;;  %2772 = vst [vmem:[%s4800_s6 + $0x40] sm:$0xff] %v2756_v49 }
 0x434   : > { %2773 = vst [vmem:[%s4800_s6 + $0x48] sm:$0xff] %v2757_v9 }
 0x441   : > { %v2725_v14 = vpop.permute.xlu1 %2724 }
 0x442   : > { %v2760_v58 = vsel %vm416_vm0, %v2534_v36, %v2725_v14 }
 0x443   : > { %2776 = vst [vmem:[%s4800_s6 + $0x60] sm:$0xff] %v2760_v58 }
 0x445   : > { %v2729_v28 = vpop.permute.xlu1 %2728 }
 0x446   : > { %v2762_v7 = vsel %vm416_vm0, %v2536_v56, %v2729_v28 }
 0x447   : > { %2778 = vst [vmem:[%s4800_s6 + $0x70] sm:$0xff] %v2762_v7 }
 0x472   : > { %v2727_v52 = vpop.permute.xlu0 %2726 }
 0x473   : > { %v2761_v44 = vsel %vm416_vm0, %v2535_v40, %v2727_v52 }
 0x474   : > { %2777 = vst [vmem:[%s4800_s6 + $0x68] sm:$0xff] %v2761_v44 }
 0x476   : > { %v2731_v45 = vpop.permute.xlu0 %2730 }
 0x477   : > { %v2763_v25 = vsel %vm416_vm0, %v2537_v61, %v2731_v45 }
 0x478   : > { %2779 = vst [vmem:[%s4800_s6 + $0x78] sm:$0xff] %v2763_v25 }
 0x479   : > { %3512 = shalt.err (!%p3509_p6)
}
 0x47a   : > { %s3513_s29 = scalar_lea.hbm %s4850_s11, 2048  ;;  %s3517_s6 = scalar_lea.hbm %s4911_s3, 8192 }
 0x47b   : > { %p3514_p7 = scmp.ne.s32.totalorder %s4850_s11, %s3513_s29  ;;  %p3518_p11 = scmp.lt.u32.totalorder %s4850_s11, %s4911_s3 }
 0x47c   : > { %p3519_p12 = scmp.lt.u32.totalorder %s3517_s6, %s3513_s29  ;;  %p3521_p0 = scmp.lt.u32.totalorder %s3513_s29, %s4850_s11 }
 0x47d   : > { %p3515_p9 = pnand %p3514_p7, %p3674_p3 }
 0x47e   : > { %p3520_p13 = por %p3519_p12, %p3518_p11 }
 0x47f   : > { %p3516_p10 = pneg %p3515_p9 }
 0x480   : > { %p3522_p1 = por %p3521_p0, %p3520_p13 }
 0x482   : > { %p3523_p2 = pnand %p3522_p1, %p3516_p10 }
 0x484   : > { %3526 = shalt.err (!%p3523_p2)
}
 0x485   : > { %s3600_s10 = smov 128   ;;  %s3601_s16 = smov 256  }
 0x486   : > { %s3602_s15 = smov 8  }
 0x487   : > { %3227 = dma.vmem_to_hbm [thread:$0]  (%p3674_p3), %s4844_s9, 2048, %s4850_s11, %s4856_s20, %s3600_s10, %s3601_s16, %s3602_s15  }
 0x488 PF: > { %p3233_p4 = scmp.ge.s32.totalorder %s3593_s19, 2  ;;  %s2813_s21 = sand.u32 1, %s3565_s12  }
 0x489   : > { %s2814_s24 = scalar_lea.sflag [#allocation7], %s2813_s21 }
 0x48a   : > { %p3230_p5 = pnand %p3233_p4, %p3683_p8 }
 0x48c   : > { %3560 = dma.done.wait (!%p3230_p5), %s2814_s24, 2048  }
 0x48d   : > { %3562 = vsyncadd (!%p3230_p5), %s2814_s24, 4294965248  ;;  %s16_s19 = sadd.s32 1, %s3593_s19   ;;  %s5042_s12 = smov %s3569_s13 }
 0x48e   : > { %p13_p6 = scmp.ge.s32.totalorder %s16_s19, 6   ;;  %s5043_s13 = smov %s3573_s14 }
 0x48f   : > { %s5044_s14 = smov %s3692_s30  ;;  %s5045_s15 = smov %s3585_s17 }
 0x490   : > { %s5046_s16 = smov %s3589_s18  ;;  %s5047_s17 = smov %s5050_s22 }
 0x491   : > { %s5048_s18 = smov %s5054_s23  ;;  %15 = sbr.rel (!%p13_p6) target bundleno = 5 (0x5), region = 83 }
 0x498   :  { %2819 = vsyncpa [#allocation7], 1 }
 0x499   :  { %2821 = vsyncpa [#allocation7 + $0x1], 1 }

</bundles_post_ra>
